<compile_context>
chip_gen: v7x
topology: tpu7x:2x2x1
jax: 0.10.0
libtpu: 0.0.40
codegen_flags: <defaults>
</compile_context>

<pallas_src>
import jax
import jax.numpy as jnp
from jax import lax
from jax.experimental import pallas as pl
from jax.experimental.pallas import tpu as pltpu

# ----------------------------- configuration -------------------------------
B = 2            # batch
INP = 32         # input channels
OUP = 32         # output channels (== INP, stride == 1 -> residual connection)
H_W = 8          # spatial size (h == w); TVConv operates at a fixed h x w
STRIDE = 1
EXPAND_RATIO = 4                      # hidden_dim = 32 * 4 = 128 (one lane)
HIDDEN = int(round(INP * EXPAND_RATIO))
TVCONV_K = 3
K2 = TVCONV_K * TVCONV_K
CENTER = K2 // 2
POSI_CHANS = 4
INTER_CHANS = 64
INTER_LAYERS = 3
EPS_BN = 1e-5
EPS_LN = 1e-5
ROWS_PER_IMG = H_W * H_W              # 64 rows per image
NROWS = B * ROWS_PER_IMG              # 128 rows: batch folded into matmul M


# ----------------------------- parameter init ------------------------------
def _uniform(key, shape, fan_in):
    bound = 1.0 / (fan_in ** 0.5)
    return jax.random.uniform(key, shape, jnp.float32, -bound, bound)


def _bn_affine(key, chans):
    """Eval-mode BatchNorm folded into per-channel (scale, shift)."""
    k1, k2, k3, k4 = jax.random.split(key, 4)
    gamma = jax.random.uniform(k1, (chans,), jnp.float32, 0.5, 1.5)
    beta = jax.random.uniform(k2, (chans,), jnp.float32, -0.5, 0.5)
    mean = jax.random.uniform(k3, (chans,), jnp.float32, -0.1, 0.1)
    var = jax.random.uniform(k4, (chans,), jnp.float32, 0.5, 1.5)
    scale = gamma / jnp.sqrt(var + EPS_BN)
    shift = beta - mean * scale
    return scale.reshape(1, chans), shift.reshape(1, chans)


def _conv3x3_nchw(x, w):
    return lax.conv_general_dilated(
        x, w, window_strides=(1, 1), padding=((1, 1), (1, 1)),
        dimension_numbers=("NCHW", "OIHW", "NCHW"))


def _gen_tvconv_weight(params):
    """TVConv.weight_layers(posi_map) -> (1, HIDDEN, K2, H, W).

    Input-independent (posi_map is a parameter), so computed in plain JAX.
    """
    y = params["posi_map"]
    for w, g, b in params["gen_blocks"]:
        y = _conv3x3_nchw(y, w)
        m = jnp.mean(y, axis=(1, 2, 3), keepdims=True)
        v = jnp.var(y, axis=(1, 2, 3), keepdims=True)
        y = (y - m) / jnp.sqrt(v + EPS_LN) * g[None] + b[None]   # LayerNorm([C,h,w])
        y = jnp.maximum(y, 0.0)                                  # ReLU
    y = _conv3x3_nchw(y, params["gen_final"])                    # (1, K2*HIDDEN, h, w)
    return y.reshape(1, HIDDEN, K2, H_W, H_W)                    # torch .view order


def _prep_tvconv_kernel_weight(tv_scaled_bf16):
    """(1, HIDDEN, K2, H, W) bf16 -> (K2, H*W, HIDDEN) bf16 kernel layout.

    For each tap kk the (H, W) map is flattened to rows (row-major) and
    out-of-image positions are ZEROED.  Because every wrap-around row of the
    kernel's per-image mod-(H*W) sublane roll corresponds to an out-of-image
    tap, that mask also makes the rolls exact -- no in-kernel masking needed.
    NOT batch-tiled: the same 64-row slab is applied to each image in-kernel,
    halving the dominant HBM payload (144 KB vs 288 KB).
    """
    w = jnp.transpose(tv_scaled_bf16[0], (1, 2, 3, 0))           # (K2, H, W, HIDDEN)
    dy = jnp.arange(K2) // TVCONV_K - 1                          # (K2,)
    dx = jnp.arange(K2) % TVCONV_K - 1                           # (K2,)
    ii = jnp.arange(H_W)
    row_ok = (ii[None, :] + dy[:, None] >= 0) & (ii[None, :] + dy[:, None] < H_W)
    col_ok = (ii[None, :] + dx[:, None] >= 0) & (ii[None, :] + dx[:, None] < H_W)
    mask = row_ok[:, :, None] & col_ok[:, None, :]               # (K2, H, W)
    w = jnp.where(mask[..., None], w, jnp.zeros_like(w))
    return w.reshape(K2, ROWS_PER_IMG, HIDDEN)                   # (K2, 64, HIDDEN)


def init_params(key):
    ks = jax.random.split(key, 12)
    p = {}
    # expand 1x1 conv (ConvBNReLU): matmul form (Cin, hidden)
    p["w1"] = _uniform(ks[0], (INP, HIDDEN), INP)
    p["s1"], p["b1"] = _bn_affine(ks[1], HIDDEN)
    # TVConv BN
    p["s2"], p["b2"] = _bn_affine(ks[2], HIDDEN)
    # project 1x1 conv: matmul form (hidden, oup)
    p["w3"] = _uniform(ks[3], (HIDDEN, OUP), HIDDEN)
    p["s3"], p["b3"] = _bn_affine(ks[4], OUP)
    # TVConv weight generator (posi_map + _ConvBlock stack + final conv)
    p["posi_map"] = jnp.ones((1, POSI_CHANS, H_W, H_W), jnp.float32)  # nn.init.ones_
    blocks = []
    in_c = POSI_CHANS
    gkeys = jax.random.split(ks[5], INTER_LAYERS + 2)
    for li in range(INTER_LAYERS + 1):
        w = _uniform(gkeys[li], (INTER_CHANS, in_c, 3, 3), in_c * 9)
        g = jnp.ones((INTER_CHANS, H_W, H_W), jnp.float32)   # LayerNorm weight init
        b = jnp.zeros((INTER_CHANS, H_W, H_W), jnp.float32)  # LayerNorm bias init
        blocks.append((w, g, b))
        in_c = INTER_CHANS
    p["gen_blocks"] = blocks
    p["gen_final"] = _uniform(gkeys[-1], (K2 * HIDDEN, INTER_CHANS, 3, 3),
                              INTER_CHANS * 9)

    # ---- folds (all input-independent, hoisted out of the forward pass) ----
    # Eval-BN scales folded into the adjacent linear weights:
    p["w1s"] = p["w1"] * p["s1"]                 # (INP, HIDDEN) * per-hidden scale
    p["w3s"] = p["w3"] * p["s3"]                 # (HIDDEN, OUP) * per-out scale
    # TVConv weight: generate, fold BN2 scale in f32, THEN cast to bf16 so the
    # kernel and the reference consume identically-rounded values.
    tv_f32 = _gen_tvconv_weight(p)                               # (1,HIDDEN,K2,H,W)
    tv_scaled = tv_f32 * p["s2"].reshape(1, HIDDEN, 1, 1, 1)
    tv_scaled_bf16 = tv_scaled.astype(jnp.bfloat16)
    p["tv_weight_eff"] = tv_scaled_bf16.astype(jnp.float32)      # reference copy
    p["tvw_kernel"] = _prep_tvconv_kernel_weight(tv_scaled_bf16)  # (K2,64,HIDDEN) bf16
    return p


# ------------------------------ Pallas kernel -------------------------------
def _tvconv_ir_kernel(x_ref, w1_ref, b1_ref, tvw_hbm, b2_ref, w3_ref, b3_ref,
                      o_ref, tvw_vmem, dma_sem):
    # Kick off the dominant (144 KB bf16) TVConv-weight DMA immediately and
    # overlap it with the expand matmul + BN1 + ReLU6.  With grid=(1,) an
    # auto-pipelined copy would land before the body runs (fully exposed).
    tvw_cp = pltpu.make_async_copy(tvw_hbm, tvw_vmem, dma_sem)
    tvw_cp.start()

    x2 = x_ref[...]                                          # (NROWS, INP)

    # (1) expand 1x1 conv (BN1 scale pre-folded into w1s) + bias + ReLU6
    y1 = jnp.dot(x2, w1_ref[...], preferred_element_type=jnp.float32)
    y1 = jnp.clip(y1 + b1_ref[...], 0.0, 6.0)                # (NROWS, HIDDEN)

    tvw_cp.wait()

    b2 = b2_ref[...]
    w3 = w3_ref[...]
    b3 = b3_ref[...]

    # (2)-(4) per image (64-row half), bounding the live set to ~32 vregs:
    #   TVConv: 9 spatially-variant taps as per-image sublane rolls (XLU slot,
    #   overlaps the VALU MACs) of the 64-row hidden slab.  The shared
    #   (64, HIDDEN) bf16 tap weight (BN2 scale pre-folded) is cast to f32 at
    #   the point of use; out-of-image taps (which cover every mod-64 roll
    #   wrap-around) were zeroed at init, so no masking is needed.
    #   Then BN2 bias + ReLU6, projection (BN3 scale pre-folded) + bias, and
    #   the residual add.
    outs = []
    for img in range(B):
        r0 = img * ROWS_PER_IMG
        y1h = y1[r0:r0 + ROWS_PER_IMG, :]                    # (64, HIDDEN)
        acc = tvw_vmem[CENTER].astype(jnp.float32) * y1h     # center tap, s == 0
        for kk in range(K2):
            if kk == CENTER:
                continue
            s = (kk // TVCONV_K - 1) * H_W + (kk % TVCONV_K - 1)
            shifted = pltpu.roll(y1h, shift=(-s) % ROWS_PER_IMG, axis=0)
            acc = acc + tvw_vmem[kk].astype(jnp.float32) * shifted
        y2h = jnp.clip(acc + b2, 0.0, 6.0)                   # (64, HIDDEN)
        y3h = jnp.dot(y2h, w3, preferred_element_type=jnp.float32) + b3
        outs.append(x2[r0:r0 + ROWS_PER_IMG, :] + y3h)       # (64, OUP)

    o_ref[...] = jnp.concatenate(outs, axis=0).astype(o_ref.dtype)


def tvconv_inverted_residual(x_nchw, params):
    """Forward pass. x_nchw: (B, INP, H, W) float32 -> (B, OUP, H, W) float32."""
    Bn, C, H, W = x_nchw.shape
    assert Bn == B and C == INP and H == H_W and W == H_W
    # NCHW -> NHWC -> (B*H*W, C): rows are batch-major, then spatial row-major.
    x_flat = jnp.transpose(x_nchw, (0, 2, 3, 1)).reshape(Bn * H * W, C)

    out_flat = pl.pallas_call(
        _tvconv_ir_kernel,
        out_shape=jax.ShapeDtypeStruct((NROWS, OUP), jnp.float32),
        grid_spec=pltpu.PrefetchScalarGridSpec(
            num_scalar_prefetch=0,
            grid=(1,),                                  # whole problem in one step
            in_specs=[
                pl.BlockSpec((NROWS, INP), lambda i: (0, 0)),
                pl.BlockSpec((INP, HIDDEN), lambda i: (0, 0)),
                pl.BlockSpec((1, HIDDEN), lambda i: (0, 0)),
                pl.BlockSpec(memory_space=pl.ANY),      # tvw: manual DMA overlap
                pl.BlockSpec((1, HIDDEN), lambda i: (0, 0)),
                pl.BlockSpec((HIDDEN, OUP), lambda i: (0, 0)),
                pl.BlockSpec((1, OUP), lambda i: (0, 0)),
            ],
            out_specs=pl.BlockSpec((NROWS, OUP), lambda i: (0, 0)),
            scratch_shapes=[
                pltpu.VMEM((K2, ROWS_PER_IMG, HIDDEN), jnp.bfloat16),
                pltpu.SemaphoreType.DMA,
            ],
        ),
        compiler_params=pltpu.CompilerParams(
            dimension_semantics=("arbitrary",)),
    )(x_flat, params["w1s"], params["b1"], params["tvw_kernel"],
      params["b2"], params["w3s"], params["b3"])

    return jnp.transpose(out_flat.reshape(Bn, H, W, OUP), (0, 3, 1, 2))


# --------------------------- pure-JAX reference -----------------------------
def reference_forward(x, p):
    """Mirror of the PyTorch forward (eval-mode BN) in NCHW, plain JAX.

    The TVConv + eval-BN2 pair is expressed through the exact per-channel
    identity  BN2(TVConv_w(y)) == TVConv_{w*s2}(y) + b2 ; `tv_weight_eff` is
    that folded weight rounded to bf16 exactly as the kernel consumes it, so
    kernel and reference share identical TVConv weights.
    """
    Bn, C, H, W = x.shape
    y = jnp.einsum("bchw,cd->bdhw", x, p["w1"])
    y = jnp.clip(y * p["s1"].reshape(1, -1, 1, 1)
                 + p["b1"].reshape(1, -1, 1, 1), 0.0, 6.0)
    yp = jnp.pad(y, ((0, 0), (0, 0), (1, 1), (1, 1)))
    # nn.Unfold patch order: (c, kh, kw) -> index 2 runs over kh*k + kw
    patches = jnp.stack(
        [yp[:, :, dy:dy + H, dx:dx + W] for dy in range(3) for dx in range(3)],
        axis=2)                                       # (B, hidden, 9, H, W)
    y = (p["tv_weight_eff"] * patches).sum(axis=2)    # (B, hidden, H, W)
    y = jnp.clip(y + p["b2"].reshape(1, -1, 1, 1), 0.0, 6.0)
    y = jnp.einsum("bchw,cd->bdhw", y, p["w3"])
    y = y * p["s3"].reshape(1, -1, 1, 1) + p["b3"].reshape(1, -1, 1, 1)
    return x + y                                      # use_res_connect


# ----------------------------------- main -----------------------------------
if __name__ == "__main__":
    key = jax.random.PRNGKey(0)
    kx, kp = jax.random.split(key)
    params = init_params(kp)
    x = jax.random.normal(kx, (B, INP, H_W, H_W), jnp.float32)

    out = tvconv_inverted_residual(x, params)
    out = jax.block_until_ready(out)

    ref = jax.block_until_ready(reference_forward(x, params))
    assert out.shape == (B, OUP, H_W, H_W)
    # TVConv weights are rounding-matched (same folded bf16 values on both
    # sides); the tolerance only needs to cover f32 matmul-path differences
    # between the MXU kernel and the XLA reference.
    assert jnp.allclose(out, ref, rtol=1e-2, atol=1e-2), (
        float(jnp.max(jnp.abs(out - ref))))

    print("KERNEL_OK")
</pallas_src>

<mosaic_0001>
module attributes {stable_mosaic.version = 11 : i64} {
  func.func @_tvconv_ir_kernel(%arg0: i32, %arg1: memref<128x32xf32, #tpu.memory_space<vmem>>, %arg2: memref<32x128xf32, #tpu.memory_space<vmem>>, %arg3: memref<1x128xf32, #tpu.memory_space<vmem>>, %arg4: memref<9x64x128xbf16, #tpu.memory_space<any>>, %arg5: memref<1x128xf32, #tpu.memory_space<vmem>>, %arg6: memref<128x32xf32, #tpu.memory_space<vmem>>, %arg7: memref<1x32xf32, #tpu.memory_space<vmem>>, %arg8: memref<128x32xf32, #tpu.memory_space<vmem>>, %arg9: memref<9x64x128xbf16, #tpu.memory_space<vmem>>, %arg10: memref<!tpu.dma_semaphore, #tpu.memory_space<semaphore_mem>>) attributes {dimension_semantics = [#tpu.dimension_semantics<arbitrary>], iteration_bounds = array<i64: 1>, scalar_prefetch = 0 : i64, scratch_operands = 2 : i64, tpu.core_type = #tpu.core_type<tc>, window_params = [{pipeline_mode = #tpu.pipeline_mode<synchronous>, transform_indices = @transform_0, window_bounds = array<i64: 128, 32>}, {pipeline_mode = #tpu.pipeline_mode<synchronous>, transform_indices = @transform_1, window_bounds = array<i64: 32, 128>}, {pipeline_mode = #tpu.pipeline_mode<synchronous>, transform_indices = @transform_2, window_bounds = array<i64: 1, 128>}, {}, {pipeline_mode = #tpu.pipeline_mode<synchronous>, transform_indices = @transform_4, window_bounds = array<i64: 1, 128>}, {pipeline_mode = #tpu.pipeline_mode<synchronous>, transform_indices = @transform_5, window_bounds = array<i64: 128, 32>}, {pipeline_mode = #tpu.pipeline_mode<synchronous>, transform_indices = @transform_6, window_bounds = array<i64: 1, 32>}, {pipeline_mode = #tpu.pipeline_mode<synchronous>, transform_indices = @transform_7, window_bounds = array<i64: 128, 32>}]} {
    tpu.enqueue_dma source(%arg4 : memref<9x64x128xbf16, #tpu.memory_space<any>>) target(%arg9 : memref<9x64x128xbf16, #tpu.memory_space<vmem>>) target_semaphore(%arg10 : memref<!tpu.dma_semaphore, #tpu.memory_space<semaphore_mem>>)
    %c0 = arith.constant 0 : index
    %c0_0 = arith.constant 0 : index
    %0 = vector.load %arg1[%c0, %c0_0] : memref<128x32xf32, #tpu.memory_space<vmem>>, vector<128x32xf32>
    %c0_1 = arith.constant 0 : index
    %c0_2 = arith.constant 0 : index
    %1 = vector.load %arg2[%c0_1, %c0_2] : memref<32x128xf32, #tpu.memory_space<vmem>>, vector<32x128xf32>
    %cst = arith.constant dense<0.000000e+00> : vector<128x128xf32>
    %2 = tpu.matmul %0, %1, %cst {dimension_numbers = #tpu.dot_dimension_numbers<[1], [0], [0], [1], [0, 0, 1, 1], [], []>} : vector<128x32xf32>, vector<32x128xf32>, vector<128x128xf32> -> vector<128x128xf32>
    %c0_3 = arith.constant 0 : index
    %c0_4 = arith.constant 0 : index
    %3 = vector.load %arg3[%c0_3, %c0_4] : memref<1x128xf32, #tpu.memory_space<vmem>>, vector<1x128xf32>
    %4 = vector.broadcast %3 : vector<1x128xf32> to vector<128x128xf32>
    %5 = arith.addf %2, %4 : vector<128x128xf32>
    %cst_5 = arith.constant 0.000000e+00 : f32
    %cst_6 = arith.constant 6.000000e+00 : f32
    %6 = vector.broadcast %cst_5 : f32 to vector<128x128xf32>
    %7 = arith.maximumf %6, %5 : vector<128x128xf32>
    %8 = vector.broadcast %cst_6 : f32 to vector<128x128xf32>
    %9 = arith.minimumf %8, %7 : vector<128x128xf32>
    tpu.wait_dma2 semaphore(%arg10 : memref<!tpu.dma_semaphore, #tpu.memory_space<semaphore_mem>>) src(%arg4 : memref<9x64x128xbf16, #tpu.memory_space<any>>) dst(%arg9 : memref<9x64x128xbf16, #tpu.memory_space<vmem>>)
    %c0_7 = arith.constant 0 : index
    %c0_8 = arith.constant 0 : index
    %10 = vector.load %arg5[%c0_7, %c0_8] : memref<1x128xf32, #tpu.memory_space<vmem>>, vector<1x128xf32>
    %c0_9 = arith.constant 0 : index
    %c0_10 = arith.constant 0 : index
    %11 = vector.load %arg6[%c0_9, %c0_10] : memref<128x32xf32, #tpu.memory_space<vmem>>, vector<128x32xf32>
    %c0_11 = arith.constant 0 : index
    %c0_12 = arith.constant 0 : index
    %12 = vector.load %arg7[%c0_11, %c0_12] : memref<1x32xf32, #tpu.memory_space<vmem>>, vector<1x32xf32>
    %13 = vector.extract_strided_slice %9 {offsets = [0, 0], sizes = [64, 128], strides = [1, 1]} : vector<128x128xf32> to vector<64x128xf32>
    %c4 = arith.constant 4 : index
    %c0_13 = arith.constant 0 : index
    %c0_14 = arith.constant 0 : index
    %14 = vector.load %arg9[%c4, %c0_13, %c0_14] : memref<9x64x128xbf16, #tpu.memory_space<vmem>>, vector<1x64x128xbf16>
    %15 = vector.shape_cast %14 : vector<1x64x128xbf16> to vector<64x128xbf16>
    %16 = arith.extf %15 : vector<64x128xbf16> to vector<64x128xf32>
    %17 = arith.mulf %16, %13 : vector<64x128xf32>
    %c9_i32 = arith.constant 9 : i32
    %18 = tpu.dynamic_rotate %13 by %c9_i32 dim 0 : vector<64x128xf32>, i32 -> vector<64x128xf32>
    %c0_15 = arith.constant 0 : index
    %c0_16 = arith.constant 0 : index
    %c0_17 = arith.constant 0 : index
    %19 = vector.load %arg9[%c0_15, %c0_16, %c0_17] : memref<9x64x128xbf16, #tpu.memory_space<vmem>>, vector<1x64x128xbf16>
    %20 = vector.shape_cast %19 : vector<1x64x128xbf16> to vector<64x128xbf16>
    %21 = arith.extf %20 : vector<64x128xbf16> to vector<64x128xf32>
    %22 = arith.mulf %21, %18 : vector<64x128xf32>
    %23 = arith.addf %17, %22 : vector<64x128xf32>
    %c8_i32 = arith.constant 8 : i32
    %24 = tpu.dynamic_rotate %13 by %c8_i32 dim 0 : vector<64x128xf32>, i32 -> vector<64x128xf32>
    %c1 = arith.constant 1 : index
    %c0_18 = arith.constant 0 : index
    %c0_19 = arith.constant 0 : index
    %25 = vector.load %arg9[%c1, %c0_18, %c0_19] : memref<9x64x128xbf16, #tpu.memory_space<vmem>>, vector<1x64x128xbf16>
    %26 = vector.shape_cast %25 : vector<1x64x128xbf16> to vector<64x128xbf16>
    %27 = arith.extf %26 : vector<64x128xbf16> to vector<64x128xf32>
    %28 = arith.mulf %27, %24 : vector<64x128xf32>
    %29 = arith.addf %23, %28 : vector<64x128xf32>
    %c7_i32 = arith.constant 7 : i32
    %30 = tpu.dynamic_rotate %13 by %c7_i32 dim 0 : vector<64x128xf32>, i32 -> vector<64x128xf32>
    %c2 = arith.constant 2 : index
    %c0_20 = arith.constant 0 : index
    %c0_21 = arith.constant 0 : index
    %31 = vector.load %arg9[%c2, %c0_20, %c0_21] : memref<9x64x128xbf16, #tpu.memory_space<vmem>>, vector<1x64x128xbf16>
    %32 = vector.shape_cast %31 : vector<1x64x128xbf16> to vector<64x128xbf16>
    %33 = arith.extf %32 : vector<64x128xbf16> to vector<64x128xf32>
    %34 = arith.mulf %33, %30 : vector<64x128xf32>
    %35 = arith.addf %29, %34 : vector<64x128xf32>
    %c1_i32 = arith.constant 1 : i32
    %36 = tpu.dynamic_rotate %13 by %c1_i32 dim 0 : vector<64x128xf32>, i32 -> vector<64x128xf32>
    %c3 = arith.constant 3 : index
    %c0_22 = arith.constant 0 : index
    %c0_23 = arith.constant 0 : index
    %37 = vector.load %arg9[%c3, %c0_22, %c0_23] : memref<9x64x128xbf16, #tpu.memory_space<vmem>>, vector<1x64x128xbf16>
    %38 = vector.shape_cast %37 : vector<1x64x128xbf16> to vector<64x128xbf16>
    %39 = arith.extf %38 : vector<64x128xbf16> to vector<64x128xf32>
    %40 = arith.mulf %39, %36 : vector<64x128xf32>
    %41 = arith.addf %35, %40 : vector<64x128xf32>
    %c63_i32 = arith.constant 63 : i32
    %42 = tpu.dynamic_rotate %13 by %c63_i32 dim 0 : vector<64x128xf32>, i32 -> vector<64x128xf32>
    %c5 = arith.constant 5 : index
    %c0_24 = arith.constant 0 : index
    %c0_25 = arith.constant 0 : index
    %43 = vector.load %arg9[%c5, %c0_24, %c0_25] : memref<9x64x128xbf16, #tpu.memory_space<vmem>>, vector<1x64x128xbf16>
    %44 = vector.shape_cast %43 : vector<1x64x128xbf16> to vector<64x128xbf16>
    %45 = arith.extf %44 : vector<64x128xbf16> to vector<64x128xf32>
    %46 = arith.mulf %45, %42 : vector<64x128xf32>
    %47 = arith.addf %41, %46 : vector<64x128xf32>
    %c57_i32 = arith.constant 57 : i32
    %48 = tpu.dynamic_rotate %13 by %c57_i32 dim 0 : vector<64x128xf32>, i32 -> vector<64x128xf32>
    %c6 = arith.constant 6 : index
    %c0_26 = arith.constant 0 : index
    %c0_27 = arith.constant 0 : index
    %49 = vector.load %arg9[%c6, %c0_26, %c0_27] : memref<9x64x128xbf16, #tpu.memory_space<vmem>>, vector<1x64x128xbf16>
    %50 = vector.shape_cast %49 : vector<1x64x128xbf16> to vector<64x128xbf16>
    %51 = arith.extf %50 : vector<64x128xbf16> to vector<64x128xf32>
    %52 = arith.mulf %51, %48 : vector<64x128xf32>
    %53 = arith.addf %47, %52 : vector<64x128xf32>
    %c56_i32 = arith.constant 56 : i32
    %54 = tpu.dynamic_rotate %13 by %c56_i32 dim 0 : vector<64x128xf32>, i32 -> vector<64x128xf32>
    %c7 = arith.constant 7 : index
    %c0_28 = arith.constant 0 : index
    %c0_29 = arith.constant 0 : index
    %55 = vector.load %arg9[%c7, %c0_28, %c0_29] : memref<9x64x128xbf16, #tpu.memory_space<vmem>>, vector<1x64x128xbf16>
    %56 = vector.shape_cast %55 : vector<1x64x128xbf16> to vector<64x128xbf16>
    %57 = arith.extf %56 : vector<64x128xbf16> to vector<64x128xf32>
    %58 = arith.mulf %57, %54 : vector<64x128xf32>
    %59 = arith.addf %53, %58 : vector<64x128xf32>
    %c55_i32 = arith.constant 55 : i32
    %60 = tpu.dynamic_rotate %13 by %c55_i32 dim 0 : vector<64x128xf32>, i32 -> vector<64x128xf32>
    %c8 = arith.constant 8 : index
    %c0_30 = arith.constant 0 : index
    %c0_31 = arith.constant 0 : index
    %61 = vector.load %arg9[%c8, %c0_30, %c0_31] : memref<9x64x128xbf16, #tpu.memory_space<vmem>>, vector<1x64x128xbf16>
    %62 = vector.shape_cast %61 : vector<1x64x128xbf16> to vector<64x128xbf16>
    %63 = arith.extf %62 : vector<64x128xbf16> to vector<64x128xf32>
    %64 = arith.mulf %63, %60 : vector<64x128xf32>
    %65 = arith.addf %59, %64 : vector<64x128xf32>
    %66 = vector.broadcast %10 : vector<1x128xf32> to vector<64x128xf32>
    %67 = arith.addf %65, %66 : vector<64x128xf32>
    %cst_32 = arith.constant 0.000000e+00 : f32
    %cst_33 = arith.constant 6.000000e+00 : f32
    %68 = vector.broadcast %cst_32 : f32 to vector<64x128xf32>
    %69 = arith.maximumf %68, %67 : vector<64x128xf32>
    %70 = vector.broadcast %cst_33 : f32 to vector<64x128xf32>
    %71 = arith.minimumf %70, %69 : vector<64x128xf32>
    %cst_34 = arith.constant dense<0.000000e+00> : vector<64x32xf32>
    %72 = tpu.matmul %71, %11, %cst_34 {dimension_numbers = #tpu.dot_dimension_numbers<[1], [0], [0], [1], [0, 0, 1, 1], [], []>} : vector<64x128xf32>, vector<128x32xf32>, vector<64x32xf32> -> vector<64x32xf32>
    %73 = vector.broadcast %12 : vector<1x32xf32> to vector<64x32xf32>
    %74 = arith.addf %72, %73 : vector<64x32xf32>
    %75 = vector.extract_strided_slice %0 {offsets = [0, 0], sizes = [64, 32], strides = [1, 1]} : vector<128x32xf32> to vector<64x32xf32>
    %76 = arith.addf %75, %74 : vector<64x32xf32>
    %77 = vector.extract_strided_slice %9 {offsets = [64, 0], sizes = [64, 128], strides = [1, 1]} : vector<128x128xf32> to vector<64x128xf32>
    %c4_35 = arith.constant 4 : index
    %c0_36 = arith.constant 0 : index
    %c0_37 = arith.constant 0 : index
    %78 = vector.load %arg9[%c4_35, %c0_36, %c0_37] : memref<9x64x128xbf16, #tpu.memory_space<vmem>>, vector<1x64x128xbf16>
    %79 = vector.shape_cast %78 : vector<1x64x128xbf16> to vector<64x128xbf16>
    %80 = arith.extf %79 : vector<64x128xbf16> to vector<64x128xf32>
    %81 = arith.mulf %80, %77 : vector<64x128xf32>
    %c9_i32_38 = arith.constant 9 : i32
    %82 = tpu.dynamic_rotate %77 by %c9_i32_38 dim 0 : vector<64x128xf32>, i32 -> vector<64x128xf32>
    %c0_39 = arith.constant 0 : index
    %c0_40 = arith.constant 0 : index
    %c0_41 = arith.constant 0 : index
    %83 = vector.load %arg9[%c0_39, %c0_40, %c0_41] : memref<9x64x128xbf16, #tpu.memory_space<vmem>>, vector<1x64x128xbf16>
    %84 = vector.shape_cast %83 : vector<1x64x128xbf16> to vector<64x128xbf16>
    %85 = arith.extf %84 : vector<64x128xbf16> to vector<64x128xf32>
    %86 = arith.mulf %85, %82 : vector<64x128xf32>
    %87 = arith.addf %81, %86 : vector<64x128xf32>
    %c8_i32_42 = arith.constant 8 : i32
    %88 = tpu.dynamic_rotate %77 by %c8_i32_42 dim 0 : vector<64x128xf32>, i32 -> vector<64x128xf32>
    %c1_43 = arith.constant 1 : index
    %c0_44 = arith.constant 0 : index
    %c0_45 = arith.constant 0 : index
    %89 = vector.load %arg9[%c1_43, %c0_44, %c0_45] : memref<9x64x128xbf16, #tpu.memory_space<vmem>>, vector<1x64x128xbf16>
    %90 = vector.shape_cast %89 : vector<1x64x128xbf16> to vector<64x128xbf16>
    %91 = arith.extf %90 : vector<64x128xbf16> to vector<64x128xf32>
    %92 = arith.mulf %91, %88 : vector<64x128xf32>
    %93 = arith.addf %87, %92 : vector<64x128xf32>
    %c7_i32_46 = arith.constant 7 : i32
    %94 = tpu.dynamic_rotate %77 by %c7_i32_46 dim 0 : vector<64x128xf32>, i32 -> vector<64x128xf32>
    %c2_47 = arith.constant 2 : index
    %c0_48 = arith.constant 0 : index
    %c0_49 = arith.constant 0 : index
    %95 = vector.load %arg9[%c2_47, %c0_48, %c0_49] : memref<9x64x128xbf16, #tpu.memory_space<vmem>>, vector<1x64x128xbf16>
    %96 = vector.shape_cast %95 : vector<1x64x128xbf16> to vector<64x128xbf16>
    %97 = arith.extf %96 : vector<64x128xbf16> to vector<64x128xf32>
    %98 = arith.mulf %97, %94 : vector<64x128xf32>
    %99 = arith.addf %93, %98 : vector<64x128xf32>
    %c1_i32_50 = arith.constant 1 : i32
    %100 = tpu.dynamic_rotate %77 by %c1_i32_50 dim 0 : vector<64x128xf32>, i32 -> vector<64x128xf32>
    %c3_51 = arith.constant 3 : index
    %c0_52 = arith.constant 0 : index
    %c0_53 = arith.constant 0 : index
    %101 = vector.load %arg9[%c3_51, %c0_52, %c0_53] : memref<9x64x128xbf16, #tpu.memory_space<vmem>>, vector<1x64x128xbf16>
    %102 = vector.shape_cast %101 : vector<1x64x128xbf16> to vector<64x128xbf16>
    %103 = arith.extf %102 : vector<64x128xbf16> to vector<64x128xf32>
    %104 = arith.mulf %103, %100 : vector<64x128xf32>
    %105 = arith.addf %99, %104 : vector<64x128xf32>
    %c63_i32_54 = arith.constant 63 : i32
    %106 = tpu.dynamic_rotate %77 by %c63_i32_54 dim 0 : vector<64x128xf32>, i32 -> vector<64x128xf32>
    %c5_55 = arith.constant 5 : index
    %c0_56 = arith.constant 0 : index
    %c0_57 = arith.constant 0 : index
    %107 = vector.load %arg9[%c5_55, %c0_56, %c0_57] : memref<9x64x128xbf16, #tpu.memory_space<vmem>>, vector<1x64x128xbf16>
    %108 = vector.shape_cast %107 : vector<1x64x128xbf16> to vector<64x128xbf16>
    %109 = arith.extf %108 : vector<64x128xbf16> to vector<64x128xf32>
    %110 = arith.mulf %109, %106 : vector<64x128xf32>
    %111 = arith.addf %105, %110 : vector<64x128xf32>
    %c57_i32_58 = arith.constant 57 : i32
    %112 = tpu.dynamic_rotate %77 by %c57_i32_58 dim 0 : vector<64x128xf32>, i32 -> vector<64x128xf32>
    %c6_59 = arith.constant 6 : index
    %c0_60 = arith.constant 0 : index
    %c0_61 = arith.constant 0 : index
    %113 = vector.load %arg9[%c6_59, %c0_60, %c0_61] : memref<9x64x128xbf16, #tpu.memory_space<vmem>>, vector<1x64x128xbf16>
    %114 = vector.shape_cast %113 : vector<1x64x128xbf16> to vector<64x128xbf16>
    %115 = arith.extf %114 : vector<64x128xbf16> to vector<64x128xf32>
    %116 = arith.mulf %115, %112 : vector<64x128xf32>
    %117 = arith.addf %111, %116 : vector<64x128xf32>
    %c56_i32_62 = arith.constant 56 : i32
    %118 = tpu.dynamic_rotate %77 by %c56_i32_62 dim 0 : vector<64x128xf32>, i32 -> vector<64x128xf32>
    %c7_63 = arith.constant 7 : index
    %c0_64 = arith.constant 0 : index
    %c0_65 = arith.constant 0 : index
    %119 = vector.load %arg9[%c7_63, %c0_64, %c0_65] : memref<9x64x128xbf16, #tpu.memory_space<vmem>>, vector<1x64x128xbf16>
    %120 = vector.shape_cast %119 : vector<1x64x128xbf16> to vector<64x128xbf16>
    %121 = arith.extf %120 : vector<64x128xbf16> to vector<64x128xf32>
    %122 = arith.mulf %121, %118 : vector<64x128xf32>
    %123 = arith.addf %117, %122 : vector<64x128xf32>
    %c55_i32_66 = arith.constant 55 : i32
    %124 = tpu.dynamic_rotate %77 by %c55_i32_66 dim 0 : vector<64x128xf32>, i32 -> vector<64x128xf32>
    %c8_67 = arith.constant 8 : index
    %c0_68 = arith.constant 0 : index
    %c0_69 = arith.constant 0 : index
    %125 = vector.load %arg9[%c8_67, %c0_68, %c0_69] : memref<9x64x128xbf16, #tpu.memory_space<vmem>>, vector<1x64x128xbf16>
    %126 = vector.shape_cast %125 : vector<1x64x128xbf16> to vector<64x128xbf16>
    %127 = arith.extf %126 : vector<64x128xbf16> to vector<64x128xf32>
    %128 = arith.mulf %127, %124 : vector<64x128xf32>
    %129 = arith.addf %123, %128 : vector<64x128xf32>
    %130 = vector.broadcast %10 : vector<1x128xf32> to vector<64x128xf32>
    %131 = arith.addf %129, %130 : vector<64x128xf32>
    %cst_70 = arith.constant 0.000000e+00 : f32
    %cst_71 = arith.constant 6.000000e+00 : f32
    %132 = vector.broadcast %cst_70 : f32 to vector<64x128xf32>
    %133 = arith.maximumf %132, %131 : vector<64x128xf32>
    %134 = vector.broadcast %cst_71 : f32 to vector<64x128xf32>
    %135 = arith.minimumf %134, %133 : vector<64x128xf32>
    %cst_72 = arith.constant dense<0.000000e+00> : vector<64x32xf32>
    %136 = tpu.matmul %135, %11, %cst_72 {dimension_numbers = #tpu.dot_dimension_numbers<[1], [0], [0], [1], [0, 0, 1, 1], [], []>} : vector<64x128xf32>, vector<128x32xf32>, vector<64x32xf32> -> vector<64x32xf32>
    %137 = vector.broadcast %12 : vector<1x32xf32> to vector<64x32xf32>
    %138 = arith.addf %136, %137 : vector<64x32xf32>
    %139 = vector.extract_strided_slice %0 {offsets = [64, 0], sizes = [64, 32], strides = [1, 1]} : vector<128x32xf32> to vector<64x32xf32>
    %140 = arith.addf %139, %138 : vector<64x32xf32>
    %141 = tpu.concatenate %76, %140 in 0 : vector<64x32xf32>, vector<64x32xf32> -> vector<128x32xf32>
    %c0_73 = arith.constant 0 : index
    %c0_74 = arith.constant 0 : index
    %142 = vector.load %arg8[%c0_73, %c0_74] : memref<128x32xf32, #tpu.memory_space<vmem>>, vector<128x32xf32>
    tpu.vector_store %arg8[%c0_73, %c0_74], %141 {strides = array<i32>} : memref<128x32xf32, #tpu.memory_space<vmem>>, vector<128x32xf32>,
    return
  }
  func.func @transform_0(%arg0: i32) -> (i32, i32) {
    %c0_i32 = arith.constant 0 : i32
    %c0_i32_0 = arith.constant 0 : i32
    %c0_i32_1 = arith.constant 0 : i32
    return %c0_i32, %c0_i32_0 : i32, i32
  }
  func.func @transform_1(%arg0: i32) -> (i32, i32) {
    %c0_i32 = arith.constant 0 : i32
    %c0_i32_0 = arith.constant 0 : i32
    %c0_i32_1 = arith.constant 0 : i32
    return %c0_i32, %c0_i32_0 : i32, i32
  }
  func.func @transform_2(%arg0: i32) -> (i32, i32) {
    %c0_i32 = arith.constant 0 : i32
    %c0_i32_0 = arith.constant 0 : i32
    %c0_i32_1 = arith.constant 0 : i32
    return %c0_i32, %c0_i32_0 : i32, i32
  }
  func.func @transform_4(%arg0: i32) -> (i32, i32) {
    %c0_i32 = arith.constant 0 : i32
    %c0_i32_0 = arith.constant 0 : i32
    %c0_i32_1 = arith.constant 0 : i32
    return %c0_i32, %c0_i32_0 : i32, i32
  }
  func.func @transform_5(%arg0: i32) -> (i32, i32) {
    %c0_i32 = arith.constant 0 : i32
    %c0_i32_0 = arith.constant 0 : i32
    %c0_i32_1 = arith.constant 0 : i32
    return %c0_i32, %c0_i32_0 : i32, i32
  }
  func.func @transform_6(%arg0: i32) -> (i32, i32) {
    %c0_i32 = arith.constant 0 : i32
    %c0_i32_0 = arith.constant 0 : i32
    %c0_i32_1 = arith.constant 0 : i32
    return %c0_i32, %c0_i32_0 : i32, i32
  }
  func.func @transform_7(%arg0: i32) -> (i32, i32) {
    %c0_i32 = arith.constant 0 : i32
    %c0_i32_0 = arith.constant 0 : i32
    %c0_i32_1 = arith.constant 0 : i32
    return %c0_i32, %c0_i32_0 : i32, i32
  }
}

</mosaic_0001>

<bundles_post_ra>
// kernel: tpu_custom_call.1
= control target key start
LH: loop header
LB: loop body
LE: loop exit
PB: predicated region body
PF: predicated region fallthrough
CT: control target
= control target key end

     0   :  { %12 = vsyncpa [#allocation5], 0  ;;  %s1512_s24 = smov [#allocation4]   ;;  %s2556_s0 = inlined_call_operand.vmem [shape: f32[128,32], index: 0, kind: input, shape index: {}]   ;;  %s2557_s1 = inlined_call_operand.hbm [shape: f32[32,128], index: 1, kind: input, shape index: {}]   ;;  %s2558_s2 = inlined_call_operand.vmem [shape: f32[1,128], index: 2, kind: input, shape index: {}]   ;;  %s2559_s3 = inlined_call_operand.vmem [shape: bf16[9,64,128], index: 3, kind: input, shape index: {}]   ;;  %s2560_s4 = inlined_call_operand.vmem [shape: f32[1,128], index: 4, kind: input, shape index: {}]   ;;  %s2561_s5 = inlined_call_operand.vmem [shape: f32[128,32], index: 5, kind: input, shape index: {}]   ;;  %s2562_s6 = inlined_call_operand.vmem [shape: f32[1,32], index: 6, kind: input, shape index: {}]   ;;  %s2563_s7 = inlined_call_operand.vmem [shape: f32[128,32], index: 7, kind: output, shape index: {}]  }
   0x1   :  { %s20_s25 = sshll.u32 %s1512_s24, 4  ;;  %s1486_s28 = scalar_lea.hbm %s2557_s1, 512  ;;  %s21_s25 = int_to_ptr.vmem [resolvable:$true] %s20_s25 }
   0x2   :  { %p1487_p0 = scmp.ne.s32.totalorder %s2557_s1, %s1486_s28  ;;  %p1490_p1 = scmp.lt.u32.totalorder %s1486_s28, %s2557_s1 }
   0x4   :  { %p1492_p2 = pnand %p1490_p1, %p1487_p0 }
   0x6   :  { %1495 = shalt.err (!%p1492_p2)
}
   0x7   :  { %s1496_s10 = scalar_lea.vmem %s21_s25, 512  ;;  %p1501_p4 = scmp.lt.s32.totalorder %s21_s25, %s21_s25 }
   0x8   :  { %p1497_p3 = scmp.ne.s32.totalorder %s21_s25, %s1496_s10  ;;  %p1502_p5 = scmp.lt.s32.totalorder %s1496_s10, %s1496_s10 }
   0xa   :  { %p1503_p6 = por %p1502_p5, %p1501_p4 }
   0xc   :  { %p1504_p7 = pnand %p1503_p6, %p1497_p3 }
   0xe   :  { %1507 = shalt.err (!%p1504_p7)
}
   0xf   :  { %s1513_s11 = smov 128   ;;  %s1514_s12 = smov 8  }
  0x10   :  { %26 = dma.hbm_to_vmem [thread:$0]  %s2557_s1, 512, %s21_s25, [#allocation5], %s1513_s11, %s1513_s11, %s1514_s12  }
  0x11   :  { %1508 = dma.done.wait [#allocation5], 512  }
  0x12   :  { %1509 = vsyncadd [#allocation5], 4294966784  ;;  %v1570_v0 = vld [vmem:[%s2559_s3] sm:$0xff]  ;;  %v1575_v1 = vld [vmem:[%s2559_s3 + $0x8] sm:$0xff] }
  0x13   :  { %v1580_v2 = vld [vmem:[%s2559_s3 + $0x10] sm:$0xff]  ;;  %v1585_v3 = vld [vmem:[%s2559_s3 + $0x18] sm:$0xff]  ;;  %v1590_v4 = vld [vmem:[%s2559_s3 + $0x20] sm:$0xff] }
  0x14   :  { %2627 = vst [vmem:[#allocation9_spill] sm:$0xff] %v1585_v3  ;;  %v1595_v5 = vld [vmem:[%s2559_s3 + $0x28] sm:$0xff]  ;;  %v1600_v6 = vld [vmem:[%s2559_s3 + $0x30] sm:$0xff]  ;;  %v1605_v7 = vld [vmem:[%s2559_s3 + $0x38] sm:$0xff] }
  0x15   :  { %2628 = vst [vmem:[#allocation10_spill] sm:$0xff] %v1605_v7  ;;  %v1610_v8 = vld [vmem:[%s2559_s3 + $0x40] sm:$0xff]  ;;  %v1615_v9 = vld [vmem:[%s2559_s3 + $0x48] sm:$0xff]  ;;  %v1620_v10 = vld [vmem:[%s2559_s3 + $0x50] sm:$0xff] }
  0x16   :  { %v1625_v11 = vld [vmem:[%s2559_s3 + $0x58] sm:$0xff]  ;;  %v1630_v12 = vld [vmem:[%s2559_s3 + $0x60] sm:$0xff]  ;;  %v1635_v13 = vld [vmem:[%s2559_s3 + $0x68] sm:$0xff] }
  0x17   :  { %2629 = vst [vmem:[#allocation11_spill] sm:$0xff] %v1625_v11  ;;  %v1640_v14 = vld [vmem:[%s2559_s3 + $0x70] sm:$0xff]  ;;  %v1645_v15 = vld [vmem:[%s2559_s3 + $0x78] sm:$0xff]  ;;  %v1650_v16 = vld [vmem:[%s2559_s3 + $0x80] sm:$0xff] }
  0x18   :  { %2630 = vst [vmem:[#allocation12_spill] sm:$0xff] %v1640_v14  ;;  %2631 = vst [vmem:[#allocation13_spill] sm:$0xff] %v1645_v15  ;;  %v1655_v17 = vld [vmem:[%s2559_s3 + $0x88] sm:$0xff]  ;;  %v1660_v18 = vld [vmem:[%s2559_s3 + $0x90] sm:$0xff] }
  0x19   :  { %v1665_v19 = vld [vmem:[%s2559_s3 + $0x98] sm:$0xff]  ;;  %v1670_v20 = vld [vmem:[%s2559_s3 + $0xa0] sm:$0xff]  ;;  %v1675_v21 = vld [vmem:[%s2559_s3 + $0xa8] sm:$0xff] }
  0x1a   :  { %2632 = vst [vmem:[#allocation14_spill] sm:$0xff] %v1665_v19  ;;  %v1680_v22 = vld [vmem:[%s2559_s3 + $0xb0] sm:$0xff]  ;;  %v1685_v23 = vld [vmem:[%s2559_s3 + $0xb8] sm:$0xff]  ;;  %v1690_v24 = vld [vmem:[%s2559_s3 + $0xc0] sm:$0xff] }
  0x1b   :  { %2633 = vst [vmem:[#allocation15_spill] sm:$0xff] %v1680_v22  ;;  %2634 = vst [vmem:[#allocation16_spill] sm:$0xff] %v1685_v23  ;;  %v1695_v25 = vld [vmem:[%s2559_s3 + $0xc8] sm:$0xff]  ;;  %v1700_v26 = vld [vmem:[%s2559_s3 + $0xd0] sm:$0xff] }
  0x1c   :  { %2635 = vst [vmem:[#allocation17_spill] sm:$0xff] %v1700_v26  ;;  %v1705_v27 = vld [vmem:[%s2559_s3 + $0xd8] sm:$0xff]  ;;  %v1710_v28 = vld [vmem:[%s2559_s3 + $0xe0] sm:$0xff]  ;;  %v1715_v29 = vld [vmem:[%s2559_s3 + $0xe8] sm:$0xff] }
  0x1d   :  { %2636 = vst [vmem:[#allocation18_spill] sm:$0xff] %v1705_v27  ;;  %v1720_v30 = vld [vmem:[%s2559_s3 + $0xf0] sm:$0xff]  ;;  %v1725_v31 = vld [vmem:[%s2559_s3 + $0xf8] sm:$0xff]  ;;  %v1730_v32 = vld [vmem:[%s2559_s3 + $0x100] sm:$0xff] }
  0x1e   :  { %2637 = vst [vmem:[#allocation19_spill] sm:$0xff] %v1720_v30  ;;  %2638 = vst [vmem:[#allocation20_spill] sm:$0xff] %v1725_v31  ;;  %v1735_v33 = vld [vmem:[%s2559_s3 + $0x108] sm:$0xff]  ;;  %v1740_v34 = vld [vmem:[%s2559_s3 + $0x110] sm:$0xff] }
  0x1f   :  { %2639 = vst [vmem:[#allocation21_spill] sm:$0xff] %v1735_v33  ;;  %2640 = vst [vmem:[#allocation22_spill] sm:$0xff] %v1740_v34  ;;  %v1745_v35 = vld [vmem:[%s2559_s3 + $0x118] sm:$0xff] }
  0x20   :  { %2641 = vst [vmem:[#allocation23_spill] sm:$0xff] %v1745_v35 }
  0x21   :  { %149 = vsyncadd [#allocation3], 4608  ;;  %v166_v36 = vld [vmem:[#allocation4] sm:$0xff]  ;;  %v167_v37 = vld [vmem:[#allocation4 + $0x8] sm:$0xff]  ;;  %vm177_vm0 = vcmask 261120  }
  0x22   :  { %v1411_v38 = vpack.c.bf16 %v167_v37, %v166_v36  ;;  %v168_v39 = vld [vmem:[#allocation4 + $0x10] sm:$0xff]  ;;  %v169_v40 = vld [vmem:[#allocation4 + $0x18] sm:$0xff]  ;;  %v1750_v41 = vld [vmem:[%s2556_s0] sm:$0xff] }
  0x23   :  { %2642 = vst [vmem:[#allocation24_spill] sm:$0xff] %v1750_v41  ;;  %v1415_v42 = vpack.c.bf16 %v169_v40, %v168_v39  ;;  %1299 = vmatprep.mubr.msk.f32.mxu0 %vm177_vm0, %v1750_v41  ;;  %v1757_v43 = vld [vmem:[%s2556_s0 + $0x8] sm:$0xff]  ;;  %v1762_v44 = vld [vmem:[%s2556_s0 + $0x10] sm:$0xff]  ;;  %v1771_v45 = vld [vmem:[%s2556_s0 + $0x18] sm:$0xff] }
  0x24   :  { %1412 = vmatprep.subr.bf16.mxu0 %v1411_v38  ;;  %2643 = vst [vmem:[#allocation25_spill] sm:$0xff] %v1757_v43  ;;  %2644 = vst [vmem:[#allocation26_spill] sm:$0xff] %v1762_v44  ;;  %v1776_v46 = vld [vmem:[%s2556_s0 + $0x20] sm:$0xff]  ;;  %v1785_v47 = vld [vmem:[%s2556_s0 + $0x28] sm:$0xff] }
  0x25   :  { %1414 = vmatpush3.bf16.msra.mxu0 %v1411_v38  ;;  %2645 = vst [vmem:[#allocation27_spill] sm:$0xff] %v1771_v45  ;;  %2646 = vst [vmem:[#allocation28_spill] sm:$0xff] %v1776_v46  ;;  %v1790_v48 = vld [vmem:[%s2556_s0 + $0x30] sm:$0xff]  ;;  %v1799_v49 = vld [vmem:[%s2556_s0 + $0x38] sm:$0xff] }
  0x26   :  { %1416 = vmatprep.subr.bf16.mxu0 %v1415_v42  ;;  %2647 = vst [vmem:[#allocation29_spill] sm:$0xff] %v1785_v47  ;;  %2648 = vst [vmem:[#allocation30_spill] sm:$0xff] %v1790_v48  ;;  %v1804_v50 = vld [vmem:[%s2556_s0 + $0x40] sm:$0xff]  ;;  %v1813_v51 = vld [vmem:[%s2556_s0 + $0x48] sm:$0xff] }
  0x27   :  { %2649 = vst [vmem:[#allocation31_spill] sm:$0xff] %v1799_v49  ;;  %2650 = vst [vmem:[#allocation32_spill] sm:$0xff] %v1804_v50  ;;  %v1818_v52 = vld [vmem:[%s2556_s0 + $0x50] sm:$0xff]  ;;  %v1827_v53 = vld [vmem:[%s2556_s0 + $0x58] sm:$0xff] }
  0x28   :  { %2651 = vst [vmem:[#allocation33_spill] sm:$0xff] %v1813_v51  ;;  %2652 = vst [vmem:[#allocation34_spill] sm:$0xff] %v1818_v52  ;;  %v1832_v54 = vld [vmem:[%s2556_s0 + $0x60] sm:$0xff]  ;;  %v1841_v55 = vld [vmem:[%s2556_s0 + $0x68] sm:$0xff] }
  0x29   :  { %1418 = vmatpush3.bf16.msra.mxu0 %v1415_v42  ;;  %2653 = vst [vmem:[#allocation35_spill] sm:$0xff] %v1827_v53  ;;  %2654 = vst [vmem:[#allocation36_spill] sm:$0xff] %v1832_v54  ;;  %v1846_v56 = vld [vmem:[%s2556_s0 + $0x70] sm:$0xff]  ;;  %v1855_v57 = vld [vmem:[%s2556_s0 + $0x78] sm:$0xff] }
  0x2a   :  { %2655 = vst [vmem:[#allocation37_spill] sm:$0xff] %v1841_v55  ;;  %2656 = vst [vmem:[#allocation38_spill] sm:$0xff] %v1846_v56  ;;  %v1203_v58 = vld [vmem:[%s2558_s2] ss:$0 sm:$0xff] }
  0x2b   :  { %2657 = vst [vmem:[#allocation39_spill] sm:$0xff] %v1855_v57 }
  0x2c   :  { %1300 = vmatmul.mubr.msk.f32.vlgmr.msra.gmra.mrb[0].mxu0 %vm177_vm0, %v1757_v43 }
  0x2d   :  { %1302 = vmatprep.mubr.msk.f32.mxu0 %vm177_vm0, %v1762_v44 }
  0x30   :  { %1303 = vmatmul.mubr.msk.f32.gmra.mrb[2].mxu0 %vm177_vm0, %v1771_v45 }
  0x31   :  { %1305 = vmatprep.mubr.msk.f32.mxu0 %vm177_vm0, %v1776_v46 }
  0x34   :  { %1306 = vmatmul.mubr.msk.f32.gmra.mrb[4].mxu0 %vm177_vm0, %v1785_v47 }
  0x35   :  { %1308 = vmatprep.mubr.msk.f32.mxu0 %vm177_vm0, %v1790_v48 }
  0x38   :  { %1309 = vmatmul.mubr.msk.f32.gmra.mrb[6].mxu0 %vm177_vm0, %v1799_v49 }
  0x39   :  { %1311 = vmatprep.mubr.msk.f32.mxu0 %vm177_vm0, %v1804_v50 }
  0x3c   :  { %1312 = vmatmul.mubr.msk.f32.gmra.mrb[8].mxu0 %vm177_vm0, %v1813_v51 }
  0x3d   :  { %1314 = vmatprep.mubr.msk.f32.mxu0 %vm177_vm0, %v1818_v52 }
  0x40   :  { %1315 = vmatmul.mubr.msk.f32.gmra.mrb[10].mxu0 %vm177_vm0, %v1827_v53 }
  0x41   :  { %1317 = vmatprep.mubr.msk.f32.mxu0 %vm177_vm0, %v1832_v54 }
  0x44   :  { %1318 = vmatmul.mubr.msk.f32.gmra.mrb[12].mxu0 %vm177_vm0, %v1841_v55 }
  0x45   :  { %1320 = vmatprep.mubr.msk.f32.mxu0 %vm177_vm0, %v1846_v56 }
  0x48   :  { %1321 = vmatmul.mubr.msk.f32.gmra.mrb[14].mxu0 %vm177_vm0, %v1855_v57 }
  0xff   :  { %v1301_v59 = vpop.f32.mrb[0].mxu0 }
 0x100   :  { %v298_v60 = vadd.f32 %v1301_v59, %v1203_v58  ;;  %v292_v61 = vpop.f32.mrb[1].mxu0 }
 0x101   :  { %v293_v62 = vadd.f32 %v1203_v58, %v292_v61 }
 0x102   :  { %v372_v63 = vmax.f32 %v298_v60, 0.0 }
 0x103   :  { %v371_v36 = vmax.f32 %v293_v62, 0.0  ;;  %v1304_v37 = vpop.f32.mrb[2].mxu0 }
 0x104   :  { %v1862_v38 = vmin.f32 %v372_v63, 6.0  ;;  %v308_v39 = vadd.f32 %v1304_v37, %v1203_v58  ;;  %v302_v40 = vpop.f32.mrb[3].mxu0 }
 0x105   :  { %v1864_v42 = vmin.f32 %v371_v36, 6.0  ;;  %v303_v56 = vadd.f32 %v1203_v58, %v302_v40 }
 0x106   :  { %v374_v48 = vmax.f32 %v308_v39, 0.0 }
 0x107   :  { %2658 = vst [vmem:[#allocation40_spill] sm:$0xff] %v1864_v42  ;;  %v373_v57 = vmax.f32 %v303_v56, 0.0  ;;  %v1307_v49 = vpop.f32.mrb[4].mxu0 }
 0x108   :  { %v1866_v54 = vmin.f32 %v374_v48, 6.0  ;;  %v318_v55 = vadd.f32 %v1307_v49, %v1203_v58  ;;  %v312_v46 = vpop.f32.mrb[5].mxu0 }
 0x109   :  { %v1868_v59 = vmin.f32 %v373_v57, 6.0  ;;  %v313_v61 = vadd.f32 %v1203_v58, %v312_v46 }
 0x10a   :  { %v376_v60 = vmax.f32 %v318_v55, 0.0 }
 0x10b   :  { %v375_v62 = vmax.f32 %v313_v61, 0.0  ;;  %v1310_v47 = vpop.f32.mrb[6].mxu0 }
 0x10c   :  { %v1870_v63 = vmin.f32 %v376_v60, 6.0  ;;  %v328_v37 = vadd.f32 %v1310_v47, %v1203_v58  ;;  %v322_v52 = vpop.f32.mrb[7].mxu0 }
 0x10d   :  { %v1872_v36 = vmin.f32 %v375_v62, 6.0  ;;  %v323_v40 = vadd.f32 %v1203_v58, %v322_v52 }
 0x10e   :  { %2659 = vst [vmem:[#allocation41_spill] sm:$0xff] %v1870_v63  ;;  %v378_v39 = vmax.f32 %v328_v37, 0.0 }
 0x10f   :  { %v377_v56 = vmax.f32 %v323_v40, 0.0  ;;  %v1313_v53 = vpop.f32.mrb[8].mxu0 }
 0x110   :  { %v1874_v48 = vmin.f32 %v378_v39, 6.0  ;;  %v338_v49 = vadd.f32 %v1313_v53, %v1203_v58  ;;  %v332_v44 = vpop.f32.mrb[9].mxu0 }
 0x111   :  { %v1876_v57 = vmin.f32 %v377_v56, 6.0  ;;  %v333_v46 = vadd.f32 %v1203_v58, %v332_v44 }
 0x112   :  { %v380_v55 = vmax.f32 %v338_v49, 0.0 }
 0x113   :  { %2660 = vst [vmem:[#allocation42_spill] sm:$0xff] %v1876_v57  ;;  %v379_v61 = vmax.f32 %v333_v46, 0.0  ;;  %v1316_v45 = vpop.f32.mrb[10].mxu0 }
 0x114   :  { %v1878_v60 = vmin.f32 %v380_v55, 6.0  ;;  %v348_v47 = vadd.f32 %v1316_v45, %v1203_v58  ;;  %v342_v50 = vpop.f32.mrb[11].mxu0 }
 0x115   :  { %v1880_v62 = vmin.f32 %v379_v61, 6.0  ;;  %v343_v52 = vadd.f32 %v1203_v58, %v342_v50 }
 0x116   :  { %v382_v37 = vmax.f32 %v348_v47, 0.0 }
 0x117   :  { %2661 = vst [vmem:[#allocation43_spill] sm:$0xff] %v1880_v62  ;;  %v381_v40 = vmax.f32 %v343_v52, 0.0  ;;  %v1319_v51 = vpop.f32.mrb[12].mxu0 }
 0x118   :  { %v1882_v39 = vmin.f32 %v382_v37, 6.0  ;;  %v358_v53 = vadd.f32 %v1319_v51, %v1203_v58  ;;  %v352_v41 = vpop.f32.mrb[13].mxu0 }
 0x119   :  { %v1884_v56 = vmin.f32 %v381_v40, 6.0  ;;  %v353_v44 = vadd.f32 %v1203_v58, %v352_v41 }
 0x11a   :  { %v384_v49 = vmax.f32 %v358_v53, 0.0 }
 0x11b   :  { %v383_v46 = vmax.f32 %v353_v44, 0.0  ;;  %v1322_v43 = vpop.f32.mrb[14].mxu0 }
 0x11c   :  { %v1886_v55 = vmin.f32 %v384_v49, 6.0  ;;  %v368_v45 = vadd.f32 %v1322_v43, %v1203_v58  ;;  %v362_v35 = vpop.f32.mrb[15].mxu0 }
 0x11d   :  { %v1888_v61 = vmin.f32 %v383_v46, 6.0  ;;  %v363_v50 = vadd.f32 %v1203_v58, %v362_v35 }
 0x11e   :  { %2662 = vst [vmem:[#allocation44_spill] sm:$0xff] %v1886_v55  ;;  %v386_v47 = vmax.f32 %v368_v45, 0.0 }
 0x11f   :  { %2663 = vst [vmem:[#allocation45_spill] sm:$0xff] %v1888_v61  ;;  %v385_v52 = vmax.f32 %v363_v50, 0.0 }
 0x120   :  { %v1890_v31 = vmin.f32 %v386_v47, 6.0 }
 0x121   :  { %v1892_v37 = vmin.f32 %v385_v52, 6.0 }
 0x122   :  { %1510 = dma.done.wait [#allocation3], 4608 }
 0x123   :  { %1511 = vsyncadd [#allocation3], 4294962688  ;;  %v2583_v41 = vunpack.c.l.bf16 %v1650_v16  ;;  %v2585_v51 = vunpack.c.h.bf16 %v1650_v16  ;;  %v2587_v40 = vunpack.c.l.bf16 %v1655_v17  ;;  %v447_v43 = vrot.slane %v1864_v42, 7  ;;  %v409_v47 = vld [vmem:[%s2561_s5] sm:$0xff]  ;;  %v410_v52 = vld [vmem:[%s2561_s5 + $0x8] sm:$0xff] }
 0x124   :  { %v448_v53 = vrot.slane %v1862_v38, 7  ;;  %v454_v44 = vrot.slane %v1874_v48, 7  ;;  %v455_v50 = vlaneseq  ;;  %v2590_v15 = vunpack.c.h.bf16 %v1590_v4  ;;  %v413_v11 = vld [vmem:[%s2561_s5 + $0x20] sm:$0xff]  ;;  %v415_v19 = vld [vmem:[%s2561_s5 + $0x30] sm:$0xff]  ;;  %v416_v55 = vld [vmem:[%s2561_s5 + $0x38] sm:$0xff] }
 0x125   :  { %v439_v49 = vmul.f32 %v2583_v41, %v1864_v42  ;;  %v440_v46 = vmul.f32 %v2585_v51, %v1862_v38  ;;  %v441_v45 = vmul.f32 %v2587_v40, %v1868_v59  ;;  %v2588_v41 = vunpack.c.l.bf16 %v1590_v4  ;;  %v421_v63 = vld [vmem:[%s2561_s5 + $0x60] sm:$0xff]  ;;  %v422_v61 = vld [vmem:[%s2561_s5 + $0x68] sm:$0xff] }
 0x126   :  { %v1915_v27 = vshrl.u32 %v455_v50, 7  ;;  %v2591_v51 = vunpack.c.l.bf16 %v1595_v5  ;;  %v523_v23 = vrot.slane %v1864_v42, 1  ;;  %v524_v40 = vrot.slane %v1862_v38, 1 }
 0x127   :  { %v507_v50 = vmul.f32 %v2588_v41, %v1874_v48  ;;  %v508_v58 = vmul.f32 %v2590_v15, %v1864_v42  ;;  %v411_v41 = vld [vmem:[%s2561_s5 + $0x10] sm:$0xff]  ;;  %v2664_v34 = vrot.slane %v1876_v57, 7  ;;  %v1419_v14 = vpack.c.bf16 %v410_v52, %v409_v47 }
 0x128   :  { %vm457_vm1 = vcmp.lt.s32.totalorder %v1915_v27, 1  ;;  %v509_v35 = vmul.f32 %v2591_v51, %v1862_v38  ;;  %v2666_v51 = vrot.slane %v1868_v59, 7  ;;  %v2670_v47 = vunpack.c.l.bf16 %v1575_v1 }
 0x129   :  { %v1947_v15 = vsel %vm457_vm1, %v2664_v34, %v454_v44  ;;  %v1957_v30 = vsel %vm457_vm1, %v447_v43, %v448_v53  ;;  %v1961_v26 = vsel %vm457_vm1, %v454_v44, %v447_v43  ;;  %v412_v34 = vld [vmem:[%s2561_s5 + $0x18] sm:$0xff]  ;;  %v2669_v43 = vunpack.c.h.bf16 %v1570_v0  ;;  %1420 = vmatprep.subr.bf16.mxu1 %v1419_v14  ;;  %1452 = vmatprep.subr.bf16.mxu0 %v1419_v14 }
 0x12a   :  { %2665 = vst [vmem:[#allocation46_spill] sm:$0xff] %v1947_v15  ;;  %v1953_v42 = vsel %vm457_vm1, %v448_v53, %v2666_v51  ;;  %2667 = vst [vmem:[#allocation47_spill] sm:$0xff] %v1961_v26  ;;  %v414_v51 = vld [vmem:[%s2561_s5 + $0x28] sm:$0xff]  ;;  %v2668_v53 = vunpack.c.l.bf16 %v1570_v0  ;;  %v480_v52 = vmul.f32 %v2670_v47, %v1957_v30  ;;  %v1423_v7 = vpack.c.bf16 %v412_v34, %v411_v41  ;;  %v419_v34 = vld [vmem:[%s2561_s5 + $0x50] sm:$0xff] }
 0x12b   :  { %v479_v44 = vmul.f32 %v2669_v43, %v1961_v26  ;;  %v1427_v3 = vpack.c.bf16 %v414_v51, %v413_v11  ;;  %v2671_v43 = vunpack.c.h.bf16 %v1575_v1  ;;  %vm531_vm2 = vcmp.lt.s32.totalorder %v1915_v27, 7  ;;  %v418_v41 = vld [vmem:[%s2561_s5 + $0x48] sm:$0xff]  ;;  %v420_v51 = vld [vmem:[%s2561_s5 + $0x58] sm:$0xff]  ;;  %1422 = vmatpush3.bf16.msra.mxu1 %v1419_v14  ;;  %1454 = vmatpush3.bf16.msra.mxu0 %v1419_v14 }
 0x12c   :  { %v478_v57 = vmul.f32 %v2668_v53, %v1947_v15  ;;  %v417_v53 = vld [vmem:[%s2561_s5 + $0x40] sm:$0xff]  ;;  %v1996_v11 = vpack.c.bf16 %v416_v55, %v415_v19  ;;  %v2010_v55 = vpack.c.bf16 %v420_v51, %v419_v34  ;;  %1424 = vmatprep.subr.bf16.mxu1 %v1423_v7  ;;  %1456 = vmatprep.subr.bf16.mxu0 %v1423_v7  ;;  %v2609_v34 = vunpack.c.l.bf16 %v1615_v9  ;;  %v2723_v27 = vld [vmem:[#allocation18_spill] sm:$0xff] }
 0x12d   :  { %v1993_v15 = vmul.f32 %v2671_v43, %v1953_v42  ;;  %v487_v43 = vadd.f32 %v479_v44, %v440_v46  ;;  %v2008_v19 = vpack.c.bf16 %v418_v41, %v417_v53  ;;  %v2618_v46 = vunpack.c.h.bf16 %v1610_v8  ;;  %v424_v44 = vld [vmem:[%s2561_s5 + $0x78] sm:$0xff] }
 0x12e   :  { %v486_v47 = vadd.f32 %v478_v57, %v439_v49  ;;  %v423_v57 = vld [vmem:[%s2561_s5 + $0x70] sm:$0xff]  ;;  %v488_v49 = vadd.f32 %v480_v52, %v441_v45  ;;  %v2022_v14 = vpack.c.bf16 %v422_v61, %v421_v63  ;;  %v2672_v33 = vrot.slane %v1868_v59, 1 }
 0x12f   :  { %v516_v41 = vadd.f32 %v508_v58, %v487_v43  ;;  %v2028_v51 = vpack.c.bf16 %v424_v44, %v423_v57  ;;  %v2036_v63 = vsel %vm531_vm2, %v523_v23, %v524_v40  ;;  %v2674_v61 = vrot.slane %v1874_v48, 1  ;;  %1426 = vmatpush3.bf16.msra.mxu1 %v1423_v7  ;;  %1458 = vmatpush3.bf16.msra.mxu0 %v1423_v7 }
 0x130   :  { %v515_v53 = vadd.f32 %v507_v50, %v486_v47  ;;  %v517_v22 = vadd.f32 %v509_v35, %v488_v49  ;;  %v537_v45 = vsel %vm531_vm2, %v524_v40, %v2672_v33  ;;  %2673 = vst [vmem:[#allocation48_spill] sm:$0xff] %v2036_v63  ;;  %v554_v58 = vmul.f32 %v2618_v46, %v2036_v63 }
 0x131   :  { %v2042_v50 = vsel %vm531_vm2, %v2674_v61, %v523_v23  ;;  %v555_v35 = vmul.f32 %v2609_v34, %v537_v45  ;;  %v2611_v52 = vunpack.c.l.bf16 %v1630_v12  ;;  %v2675_v33 = vunpack.c.l.bf16 %v1610_v8  ;;  %1428 = vmatprep.subr.bf16.mxu1 %v1427_v3  ;;  %1460 = vmatprep.subr.bf16.mxu0 %v1427_v3 }
 0x132   :  { %v2610_v47 = vunpack.c.h.bf16 %v1630_v12  ;;  %v2612_v23 = vunpack.c.l.bf16 %v1635_v13  ;;  %v2614_v43 = vunpack.c.l.bf16 %v1670_v20  ;;  %v562_v57 = vadd.f32 %v554_v58, %v516_v41 }
 0x133   :  { %v553_v40 = vmul.f32 %v2675_v33, %v2042_v50  ;;  %v563_v49 = vadd.f32 %v555_v35, %v517_v22  ;;  %v582_v44 = vmul.f32 %v2611_v52, %v1961_v26  ;;  %v2613_v7 = vunpack.c.h.bf16 %v1670_v20  ;;  %1430 = vmatpush3.bf16.msra.mxu1 %v1427_v3  ;;  %1462 = vmatpush3.bf16.msra.mxu0 %v1427_v3 }
 0x134   :  { %v583_v33 = vmul.f32 %v2610_v47, %v1957_v30  ;;  %v584_v34 = vmul.f32 %v2612_v23, %v1953_v42  ;;  %v611_v41 = vmul.f32 %v2614_v43, %v2036_v63  ;;  %v2615_v58 = vunpack.c.l.bf16 %v1690_v24  ;;  %1432 = vmatprep.subr.bf16.mxu1 %v1996_v11  ;;  %1464 = vmatprep.subr.bf16.mxu0 %v1996_v11 }
 0x135   :  { %v561_v61 = vadd.f32 %v553_v40, %v515_v53  ;;  %v612_v22 = vmul.f32 %v2613_v7, %v537_v45  ;;  %v2616_v35 = vunpack.c.l.bf16 %v1710_v28  ;;  %v2617_v53 = vunpack.c.l.bf16 %v1730_v32 }
 0x136   :  { %v591_v47 = vadd.f32 %v583_v33, %v562_v57  ;;  %v2074_v52 = vadd.f32 %v584_v34, %v563_v49  ;;  %v871_v23 = vrot.slane %v1880_v62, 7  ;;  %v640_v7 = vmul.f32 %v2615_v58, %v1957_v30 }
 0x137   :  { %v590_v40 = vadd.f32 %v582_v44, %v561_v61  ;;  %v669_v43 = vmul.f32 %v2616_v35, %v1862_v38  ;;  %v698_v3 = vmul.f32 %v2617_v53, %v537_v45  ;;  %v872_v34 = vrot.slane %v1878_v60, 7  ;;  %1434 = vmatpush3.bf16.msra.mxu1 %v1996_v11  ;;  %1466 = vmatpush3.bf16.msra.mxu0 %v1996_v11 }
 0x138   :  { %v2088_v49 = vadd.f32 %v612_v22, %v591_v47  ;;  %v2676_v44 = vunpack.c.l.bf16 %v1650_v16  ;;  %v2677_v33 = vunpack.c.h.bf16 %v1650_v16  ;;  %v2678_v58 = vunpack.c.l.bf16 %v1655_v17  ;;  %1436 = vmatprep.subr.bf16.mxu1 %v2008_v19  ;;  %1468 = vmatprep.subr.bf16.mxu0 %v2008_v19 }
 0x139   :  { %v619_v57 = vadd.f32 %v611_v41, %v590_v40  ;;  %v2619_v45 = vrot.slane %v1892_v37, 7  ;;  %v878_v41 = vrot.slane %v1890_v31, 7  ;;  %v885_v22 = vsel %vm457_vm1, %v871_v23, %v872_v34 }
 0x13a   :  { %v863_v61 = vmul.f32 %v2676_v44, %v1880_v62  ;;  %v864_v30 = vmul.f32 %v2677_v33, %v1878_v60  ;;  %v865_v38 = vmul.f32 %v2678_v58, %v1884_v56  ;;  %v2679_v16 = vunpack.c.l.bf16 %v1590_v4 }
 0x13b   :  { %v648_v47 = vadd.f32 %v640_v7, %v619_v57  ;;  %v2115_v58 = vsel %vm457_vm1, %v2619_v45, %v878_v41  ;;  %v2119_v11 = vsel %vm457_vm1, %v878_v41, %v871_v23  ;;  %v919_v7 = vrot.slane %v1880_v62, 1  ;;  %v2134_v23 = vld [vmem:[%s2560_s4] ss:$0 sm:$0xff]  ;;  %1438 = vmatpush3.bf16.msra.mxu1 %v2008_v19  ;;  %1470 = vmatpush3.bf16.msra.mxu0 %v2008_v19 }
 0x13c   :  { %v903_v40 = vmul.f32 %v2679_v16, %v1890_v31  ;;  %2680 = vst [vmem:[#allocation49_spill] sm:$0xff] %v2115_v58  ;;  %v920_v57 = vrot.slane %v1878_v60, 1  ;;  %v2681_v33 = vunpack.c.l.bf16 %v1570_v0  ;;  %v2682_v53 = vunpack.c.h.bf16 %v1570_v0  ;;  %1440 = vmatprep.subr.bf16.mxu1 %v2010_v55  ;;  %1472 = vmatprep.subr.bf16.mxu0 %v2010_v55 }
 0x13d   :  { %v677_v44 = vadd.f32 %v669_v43, %v648_v47  ;;  %v2683_v45 = vunpack.c.l.bf16 %v1575_v1  ;;  %v2684_v41 = vrot.slane %v1884_v56, 7  ;;  %v2685_v47 = vunpack.c.h.bf16 %v1590_v4 }
 0x13e   :  { %v887_v16 = vmul.f32 %v2115_v58, %v2681_v33  ;;  %v888_v46 = vmul.f32 %v2119_v11, %v2682_v53  ;;  %v2686_v53 = vunpack.c.l.bf16 %v1595_v5  ;;  %v434_v19 = vunpack.c.h.bf16 %v1655_v17 }
 0x13f   :  { %v889_v35 = vmul.f32 %v885_v22, %v2683_v45  ;;  %v2140_v43 = vsel %vm457_vm1, %v872_v34, %v2684_v41  ;;  %v904_v0 = vmul.f32 %v2685_v47, %v1880_v62  ;;  %v2625_v45 = vrot.slane %v1884_v56, 1  ;;  %1442 = vmatpush3.bf16.msra.mxu1 %v2010_v55  ;;  %1474 = vmatpush3.bf16.msra.mxu0 %v2010_v55 }
 0x140   :  { %v905_v33 = vmul.f32 %v2686_v53, %v1878_v60  ;;  %v706_v63 = vadd.f32 %v698_v3, %v677_v44  ;;  %v895_v26 = vadd.f32 %v887_v16, %v863_v61  ;;  %v896_v58 = vadd.f32 %v888_v46, %v864_v30  ;;  %1444 = vmatprep.subr.bf16.mxu1 %v2022_v14 }
 0x141   :  { %v2624_v34 = vrot.slane %v1890_v31, 1  ;;  %v897_v4 = vadd.f32 %v889_v35, %v865_v38  ;;  %v932_v41 = vsel %vm531_vm2, %v920_v57, %v2625_v45  ;;  %v2160_v47 = vsel %vm531_vm2, %v919_v7, %v920_v57  ;;  %1476 = vmatprep.subr.bf16.mxu0 %v2022_v14 }
 0x142   :  { %v720_v46 = vadd.f32 %v2134_v23, %v706_v63  ;;  %v911_v3 = vadd.f32 %v903_v40, %v895_v26  ;;  %v912_v61 = vadd.f32 %v904_v0, %v896_v58  ;;  %v2687_v38 = vunpack.c.l.bf16 %v1610_v8 }
 0x143   :  { %v2168_v35 = vsel %vm531_vm2, %v2624_v34, %v919_v7  ;;  %v913_v30 = vadd.f32 %v905_v33, %v897_v4  ;;  %v2688_v57 = vunpack.c.h.bf16 %v1610_v8  ;;  %v2689_v17 = vunpack.c.l.bf16 %v1615_v9  ;;  %1446 = vmatpush3.bf16.msra.mxu1 %v2022_v14  ;;  %1478 = vmatpush3.bf16.msra.mxu0 %v2022_v14 }
 0x144   :  { %v935_v44 = vmul.f32 %v2168_v35, %v2687_v38  ;;  %v728_v26 = vmax.f32 %v720_v46, 0.0  ;;  %v2690_v40 = vunpack.c.l.bf16 %v1630_v12  ;;  %v2691_v7 = vunpack.c.h.bf16 %v1630_v12  ;;  %1448 = vmatprep.subr.bf16.mxu1 %v2028_v51  ;;  %1480 = vmatprep.subr.bf16.mxu0 %v2028_v51 }
 0x145   :  { %v936_v16 = vmul.f32 %v2160_v47, %v2688_v57  ;;  %v937_v63 = vmul.f32 %v932_v41, %v2689_v17  ;;  %v2692_v53 = vunpack.c.l.bf16 %v1635_v13  ;;  %v502_v55 = vunpack.c.h.bf16 %v1595_v5 }
 0x146   :  { %v951_v58 = vmul.f32 %v2119_v11, %v2690_v40  ;;  %v952_v0 = vmul.f32 %v885_v22, %v2691_v7  ;;  %v943_v33 = vadd.f32 %v935_v44, %v911_v3  ;;  %v736_v46 = vmin.f32 %v728_v26, 6.0 }
 0x147   :  { %v953_v8 = vmul.f32 %v2140_v43, %v2692_v53  ;;  %v944_v4 = vadd.f32 %v936_v16, %v912_v61  ;;  %v945_v38 = vadd.f32 %v937_v63, %v913_v30  ;;  %v2693_v57 = vunpack.c.h.bf16 %v1575_v1  ;;  %1450 = vmatpush3.bf16.msra.mxu1 %v2028_v51  ;;  %1482 = vmatpush3.bf16.msra.mxu0 %v2028_v51 }
 0x148   :  { %v2694_v12 = vunpack.c.l.bf16 %v1670_v20  ;;  %v2695_v7 = vunpack.c.h.bf16 %v1670_v20  ;;  %v959_v34 = vadd.f32 %v951_v58, %v943_v33  ;;  %v2696_v3 = vunpack.c.l.bf16 %v1690_v24  ;;  %1355 = vmatprep.mubr.f32.mxu1 %v736_v46 }
 0x149   :  { %v890_v17 = vmul.f32 %v2140_v43, %v2693_v57  ;;  %v960_v45 = vadd.f32 %v952_v0, %v944_v4  ;;  %v2199_v62 = vadd.f32 %v953_v8, %v945_v38  ;;  %v2697_v1 = vunpack.c.l.bf16 %v1710_v28 }
 0x14a   :  { %v967_v40 = vmul.f32 %v2160_v47, %v2694_v12  ;;  %v968_v53 = vmul.f32 %v932_v41, %v2695_v7  ;;  %v983_v61 = vmul.f32 %v885_v22, %v2696_v3  ;;  %v442_v30 = vmul.f32 %v434_v19, %v1866_v54 }
 0x14b   :  { %v999_v5 = vmul.f32 %v2697_v1, %v1878_v60  ;;  %v510_v20 = vmul.f32 %v502_v55, %v1868_v59  ;;  %v526_v44 = vrot.slane %v1866_v54, 1  ;;  %v2698_v22 = vunpack.c.l.bf16 %v1730_v32 }
 0x14c   :  { %v975_v16 = vadd.f32 %v967_v40, %v959_v34  ;;  %v548_v14 = vunpack.c.h.bf16 %v1615_v9  ;;  %v605_v26 = vunpack.c.l.bf16 %v1675_v21  ;;  %v489_v60 = vadd.f32 %v1993_v15, %v442_v30 }
 0x14d   :  { %v1015_v63 = vmul.f32 %v932_v41, %v2698_v22  ;;  %v2699_v58 = vrot.slane %v1868_v59, 1  ;;  %v633_v8 = vunpack.c.h.bf16 %v1690_v24  ;;  %v662_v34 = vunpack.c.h.bf16 %v1710_v28 }
 0x14e   :  { %v976_v33 = vadd.f32 %v968_v53, %v960_v45  ;;  %v991_v41 = vadd.f32 %v983_v61, %v975_v16  ;;  %v691_v9 = vunpack.c.h.bf16 %v1730_v32  ;;  %v518_v15 = vadd.f32 %v510_v20, %v489_v60 }
 0x14f   :  { %v536_v0 = vsel %vm531_vm2, %v2699_v58, %v526_v44  ;;  %v641_v38 = vmul.f32 %v633_v8, %v1953_v42  ;;  %v670_v46 = vmul.f32 %v662_v34, %v1868_v59  ;;  %v922_v57 = vrot.slane %v1882_v39, 1 }
 0x150   :  { %v556_v4 = vmul.f32 %v548_v14, %v536_v0  ;;  %v1007_v12 = vadd.f32 %v999_v5, %v991_v41  ;;  %v613_v24 = vmul.f32 %v605_v26, %v536_v0  ;;  %v699_v40 = vmul.f32 %v691_v9, %v536_v0 }
 0x151   :  { %v866_v28 = vmul.f32 %v434_v19, %v1882_v39  ;;  %v649_v45 = vadd.f32 %v641_v38, %v2088_v49  ;;  %v906_v32 = vmul.f32 %v502_v55, %v1884_v56  ;;  %v2700_v51 = vrot.slane %v1884_v56, 1 }
 0x152   :  { %v984_v7 = vmul.f32 %v2140_v43, %v633_v8  ;;  %v1023_v53 = vadd.f32 %v1015_v63, %v1007_v12  ;;  %v2242_v3 = vadd.f32 %v556_v4, %v518_v15  ;;  %v1000_v49 = vmul.f32 %v662_v34, %v1884_v56 }
 0x153   :  { %v931_v42 = vsel %vm531_vm2, %v2700_v51, %v922_v57  ;;  %v898_v61 = vadd.f32 %v890_v17, %v866_v28  ;;  %v678_v5 = vadd.f32 %v670_v46, %v649_v45  ;;  %v435_v16 = vunpack.c.l.bf16 %v1660_v18 }
 0x154   :  { %v938_v1 = vmul.f32 %v931_v42, %v548_v14  ;;  %v992_v19 = vadd.f32 %v984_v7, %v976_v33  ;;  %v1016_v30 = vmul.f32 %v931_v42, %v691_v9  ;;  %v1031_v55 = vadd.f32 %v2134_v23, %v1023_v53 }
 0x155   :  { %v969_v20 = vmul.f32 %v931_v42, %v605_v26  ;;  %v450_v22 = vrot.slane %v1866_v54, 7  ;;  %v707_v60 = vadd.f32 %v699_v40, %v678_v5  ;;  %v474_v43 = vunpack.c.l.bf16 %v1580_v2  ;;  %v2702_v42 = vld [vmem:[#allocation21_spill] sm:$0xff] }
 0x156   :  { %v1008_v58 = vadd.f32 %v1000_v49, %v992_v19  ;;  %v503_v63 = vunpack.c.l.bf16 %v1600_v6  ;;  %v1039_v17 = vmax.f32 %v1031_v55, 0.0  ;;  %v914_v14 = vadd.f32 %v906_v32, %v898_v61  ;;  %v2703_v55 = vld [vmem:[#allocation45_spill] sm:$0xff] }
 0x157   :  { %v443_v0 = vmul.f32 %v435_v16, %v1872_v36  ;;  %v2701_v8 = vrot.slane %v1868_v59, 7  ;;  %v721_v26 = vadd.f32 %v2134_v23, %v707_v60  ;;  %v527_v15 = vrot.slane %v1872_v36, 1 }
 0x158   :  { %v1024_v33 = vadd.f32 %v1016_v30, %v1008_v58  ;;  %v511_v4 = vmul.f32 %v503_v63, %v1866_v54  ;;  %v1047_v9 = vmin.f32 %v1039_v17, 6.0  ;;  %v549_v38 = vunpack.c.l.bf16 %v1620_v10 }
 0x159   :  { %v2255_v34 = vsel %vm457_vm1, %v2701_v8, %v450_v22  ;;  %v606_v46 = vunpack.c.h.bf16 %v1675_v21  ;;  %v729_v12 = vmax.f32 %v721_v26, 0.0  ;;  %v621_v28 = vadd.f32 %v613_v24, %v2074_v52 }
 0x15a   :  { %v482_v41 = vmul.f32 %v474_v43, %v2255_v34  ;;  %v1032_v59 = vadd.f32 %v2134_v23, %v1024_v33  ;;  %1399 = vmatprep.mubr.f32.mxu0 %v1047_v9  ;;  %v535_v45 = vsel %vm531_vm2, %v526_v44, %v527_v15  ;;  %v634_v32 = vunpack.c.l.bf16 %v1695_v25 }
 0x15b   :  { %v663_v51 = vunpack.c.l.bf16 %v1715_v29  ;;  %v692_v7 = vunpack.c.l.bf16 %v2702_v42  ;;  %v737_v53 = vmin.f32 %v729_v12, 6.0  ;;  %v2272_v21 = vadd.f32 %v938_v1, %v914_v14  ;;  %v2705_v12 = vld [vmem:[#allocation41_spill] sm:$0xff] }
 0x15c   :  { %v490_v40 = vadd.f32 %v482_v41, %v443_v0  ;;  %v1040_v61 = vmax.f32 %v1032_v59, 0.0  ;;  %v557_v19 = vmul.f32 %v549_v38, %v535_v45  ;;  %v2274_v49 = vmul.f32 %v606_v46, %v535_v45 }
 0x15d   :  { %v642_v52 = vmul.f32 %v634_v32, %v2255_v34  ;;  %v671_v24 = vmul.f32 %v663_v51, %v1866_v54  ;;  %1356 = vmatmul.mubr.f32.vlgmr.msra.gmra.mrb[0].mxu1 %v737_v53  ;;  %v700_v30 = vmul.f32 %v692_v7, %v535_v45  ;;  %v867_v60 = vmul.f32 %v435_v16, %v2703_v55 }
 0x15e   :  { %v519_v5 = vadd.f32 %v511_v4, %v490_v40  ;;  %v1048_v44 = vmin.f32 %v1040_v61, 6.0  ;;  %v874_v58 = vrot.slane %v1882_v39, 7  ;;  %v907_v1 = vmul.f32 %v503_v63, %v1882_v39 }
 0x15f   :  { %v650_v17 = vadd.f32 %v642_v52, %v621_v28  ;;  %v923_v14 = vrot.slane %v2703_v55, 1  ;;  %v977_v0 = vadd.f32 %v969_v20, %v2199_v62  ;;  %v2704_v8 = vrot.slane %v1884_v56, 7 }
 0x160   :  { %1400 = vmatmul.mubr.f32.vlgmr.msra.gmra.mrb[16].mxu0 %v1048_v44  ;;  %v1001_v26 = vmul.f32 %v663_v51, %v1882_v39  ;;  %v436_v33 = vunpack.c.h.bf16 %v1660_v18  ;;  %v451_v16 = vrot.slane %v1872_v36, 7  ;;  %v2296_v56 = vadd.f32 %v557_v19, %v519_v5 }
 0x161   :  { %v883_v54 = vsel %vm457_vm1, %v2704_v8, %v874_v58  ;;  %v679_v41 = vadd.f32 %v671_v24, %v650_v17  ;;  %v930_v62 = vsel %vm531_vm2, %v922_v57, %v923_v14  ;;  %v475_v39 = vunpack.c.h.bf16 %v1580_v2 }
 0x162   :  { %v891_v4 = vmul.f32 %v883_v54, %v474_v43  ;;  %v985_v20 = vmul.f32 %v883_v54, %v634_v32  ;;  %v939_v63 = vmul.f32 %v930_v62, %v549_v38  ;;  %v1017_v9 = vmul.f32 %v930_v62, %v692_v7 }
 0x163   :  { %v444_v59 = vmul.f32 %v436_v33, %v2705_v12  ;;  %v708_v40 = vadd.f32 %v700_v30, %v679_v41  ;;  %v2303_v43 = vsel %vm457_vm1, %v450_v22, %v451_v16  ;;  %v504_v57 = vunpack.c.h.bf16 %v1600_v6  ;;  %v2706_v6 = vld [vmem:[#allocation15_spill] sm:$0xff] }
 0x164   :  { %v899_v18 = vadd.f32 %v891_v4, %v867_v60  ;;  %v993_v28 = vadd.f32 %v985_v20, %v977_v0  ;;  %v528_v45 = vrot.slane %v2705_v12, 1  ;;  %v550_v38 = vunpack.c.h.bf16 %v1620_v10 }
 0x165   :  { %v722_v32 = vadd.f32 %v2134_v23, %v708_v40  ;;  %v577_v53 = vunpack.c.h.bf16 %v1635_v13  ;;  %v483_v61 = vmul.f32 %v475_v39, %v2303_v43  ;;  %v512_v5 = vmul.f32 %v504_v57, %v1872_v36 }
 0x166   :  { %v915_v51 = vadd.f32 %v907_v1, %v899_v18  ;;  %v1009_v7 = vadd.f32 %v1001_v26, %v993_v28  ;;  %v534_v2 = vsel %vm531_vm2, %v527_v15, %v528_v45  ;;  %v607_v22 = vunpack.c.l.bf16 %v2706_v6 }
 0x167   :  { %v730_v19 = vmax.f32 %v722_v32, 0.0  ;;  %v970_v10 = vmul.f32 %v930_v62, %v606_v46  ;;  %v491_v44 = vadd.f32 %v483_v61, %v444_v59  ;;  %v558_v30 = vmul.f32 %v550_v38, %v534_v2  ;;  %v2707_v62 = vld [vmem:[#allocation44_spill] sm:$0xff] }
 0x168   :  { %v2318_v52 = vadd.f32 %v939_v63, %v915_v51  ;;  %v1025_v24 = vadd.f32 %v1017_v9, %v1009_v7  ;;  %v585_v13 = vmul.f32 %v577_v53, %v2255_v34  ;;  %v635_v60 = vunpack.c.h.bf16 %v1695_v25 }
 0x169   :  { %v738_v17 = vmin.f32 %v730_v19, 6.0  ;;  %v664_v0 = vunpack.c.h.bf16 %v1715_v29  ;;  %v693_v15 = vunpack.c.h.bf16 %v2702_v42  ;;  %v520_v8 = vadd.f32 %v512_v5, %v491_v44  ;;  %v2709_v19 = vld [vmem:[#allocation9_spill] sm:$0xff]  ;;  %v2710_v44 = vld [vmem:[#allocation10_spill] sm:$0xff] }
 0x16a   :  { %v1033_v1 = vadd.f32 %v2134_v23, %v1025_v24  ;;  %v593_v26 = vadd.f32 %v585_v13, %v2242_v3  ;;  %v2326_v41 = vmul.f32 %v607_v22, %v534_v2  ;;  %v643_v46 = vmul.f32 %v635_v60, %v2303_v43 }
 0x16b   :  { %1358 = vmatprep.mubr.f32.mxu1 %v738_v17  ;;  %v672_v34 = vmul.f32 %v664_v0, %v1872_v36  ;;  %v868_v25 = vmul.f32 %v436_v33, %v2707_v62  ;;  %v875_v20 = vrot.slane %v2703_v55, 7  ;;  %v2332_v63 = vadd.f32 %v558_v30, %v520_v8  ;;  %v2712_v36 = vld [vmem:[#allocation11_spill] sm:$0xff] }
 0x16c   :  { %v1041_v4 = vmax.f32 %v1033_v1, 0.0  ;;  %v622_v29 = vadd.f32 %v2274_v49, %v593_v26  ;;  %v701_v42 = vmul.f32 %v693_v15, %v534_v2  ;;  %v924_v9 = vrot.slane %v2707_v62, 1 }
 0x16d   :  { %v882_v59 = vsel %vm457_vm1, %v874_v58, %v875_v20  ;;  %v908_v40 = vmul.f32 %v504_v57, %v2703_v55  ;;  %v954_v18 = vmul.f32 %v883_v54, %v577_v53  ;;  %v1002_v32 = vmul.f32 %v664_v0, %v2703_v55  ;;  %v2708_v54 = vld [vmem:[#allocation14_spill] sm:$0xff] }
 0x16e   :  { %v1049_v3 = vmin.f32 %v1041_v4, 6.0  ;;  %v651_v28 = vadd.f32 %v643_v46, %v622_v29  ;;  %v892_v33 = vmul.f32 %v882_v59, %v475_v39  ;;  %v929_v49 = vsel %vm531_vm2, %v923_v14, %v924_v9  ;;  %v2711_v14 = vld [vmem:[#allocation42_spill] sm:$0xff]  ;;  %v2713_v4 = vld [vmem:[#allocation12_spill] sm:$0xff] }
 0x16f   :  { %v940_v51 = vmul.f32 %v929_v49, %v550_v38  ;;  %v962_v7 = vadd.f32 %v954_v18, %v2272_v21  ;;  %v986_v61 = vmul.f32 %v882_v59, %v635_v60  ;;  %v1018_v58 = vmul.f32 %v929_v49, %v693_v15 }
 0x170   :  { %1402 = vmatprep.mubr.f32.mxu0 %v1049_v3  ;;  %v680_v5 = vadd.f32 %v672_v34, %v651_v28  ;;  %v900_v57 = vadd.f32 %v892_v33, %v868_v25  ;;  %v437_v53 = vunpack.c.l.bf16 %v2708_v54  ;;  %v452_v39 = vrot.slane %v2705_v12, 7  ;;  %v2715_v33 = vld [vmem:[#allocation19_spill] sm:$0xff] }
 0x171   :  { %v978_v2 = vadd.f32 %v970_v10, %v962_v7  ;;  %v476_v24 = vunpack.c.l.bf16 %v2709_v19  ;;  %v505_v30 = vunpack.c.l.bf16 %v2710_v44  ;;  %v529_v13 = vrot.slane %v2711_v14, 1 }
 0x172   :  { %v709_v17 = vadd.f32 %v701_v42, %v680_v5  ;;  %v916_v1 = vadd.f32 %v908_v40, %v900_v57  ;;  %v445_v38 = vmul.f32 %v437_v53, %v2711_v14  ;;  %v2359_v21 = vsel %vm457_vm1, %v451_v16, %v452_v39  ;;  %v2714_v42 = vld [vmem:[#allocation17_spill] sm:$0xff] }
 0x173   :  { %v994_v60 = vadd.f32 %v986_v61, %v978_v2  ;;  %v484_v0 = vmul.f32 %v476_v24, %v2359_v21  ;;  %v513_v10 = vmul.f32 %v505_v30, %v2705_v12  ;;  %v533_v15 = vsel %vm531_vm2, %v528_v45, %v529_v13 }
 0x174   :  { %v723_v8 = vadd.f32 %v2134_v23, %v709_v17  ;;  %v971_v26 = vmul.f32 %v929_v49, %v607_v22  ;;  %v551_v46 = vunpack.c.l.bf16 %v2712_v36  ;;  %v578_v16 = vunpack.c.l.bf16 %v2713_v4 }
 0x175   :  { %v1010_v34 = vadd.f32 %v1002_v32, %v994_v60  ;;  %v492_v25 = vadd.f32 %v484_v0, %v445_v38  ;;  %v608_v29 = vunpack.c.h.bf16 %v2706_v6  ;;  %v636_v3 = vunpack.c.l.bf16 %v2714_v42  ;;  %v2716_v6 = vld [vmem:[#allocation22_spill] sm:$0xff] }
 0x176   :  { %v731_v40 = vmax.f32 %v723_v8, 0.0  ;;  %v559_v18 = vmul.f32 %v551_v46, %v533_v15  ;;  %v586_v28 = vmul.f32 %v578_v16, %v2303_v43  ;;  %v665_v7 = vunpack.c.l.bf16 %v2715_v33 }
 0x177   :  { %v2376_v45 = vadd.f32 %v940_v51, %v916_v1  ;;  %v1026_v61 = vadd.f32 %v1018_v58, %v1010_v34  ;;  %v521_v22 = vadd.f32 %v513_v10, %v492_v25  ;;  %v2378_v49 = vmul.f32 %v608_v29, %v533_v15 }
 0x178   :  { %v739_v5 = vmin.f32 %v731_v40, 6.0  ;;  %v594_v32 = vadd.f32 %v586_v28, %v2296_v56  ;;  %v644_v57 = vmul.f32 %v636_v3, %v2359_v21  ;;  %v694_v2 = vunpack.c.l.bf16 %v2716_v6 }
 0x179   :  { %v1034_v17 = vadd.f32 %v2134_v23, %v1026_v61  ;;  %v2384_v38 = vadd.f32 %v559_v18, %v521_v22  ;;  %v673_v43 = vmul.f32 %v665_v7, %v2705_v12  ;;  %v876_v51 = vrot.slane %v2707_v62, 7 }
 0x17a   :  { %1359 = vmatmul.mubr.f32.gmra.mrb[2].mxu1 %v739_v5  ;;  %v623_v58 = vadd.f32 %v2326_v41, %v594_v32  ;;  %v702_v1 = vmul.f32 %v694_v2, %v533_v15  ;;  %v869_v60 = vmul.f32 %v437_v53, %v1892_v37  ;;  %v925_v56 = vrot.slane %v1892_v37, 1 }
 0x17b   :  { %v1042_v0 = vmax.f32 %v1034_v17, 0.0  ;;  %v881_v10 = vsel %vm457_vm1, %v875_v20, %v876_v51  ;;  %v909_v8 = vmul.f32 %v505_v30, %v2707_v62  ;;  %v955_v34 = vmul.f32 %v882_v59, %v578_v16 }
 0x17c   :  { %v652_v12 = vadd.f32 %v644_v57, %v623_v58  ;;  %v893_v25 = vmul.f32 %v881_v10, %v476_v24  ;;  %v928_v41 = vsel %vm531_vm2, %v924_v9, %v925_v56  ;;  %v1003_v53 = vmul.f32 %v665_v7, %v2707_v62  ;;  %v2719_v57 = vld [vmem:[#allocation16_spill] sm:$0xff] }
 0x17d   :  { %v1050_v15 = vmin.f32 %v1042_v0, 6.0  ;;  %v941_v40 = vmul.f32 %v928_v41, %v551_v46  ;;  %v963_v18 = vadd.f32 %v955_v34, %v2318_v52  ;;  %v987_v55 = vmul.f32 %v881_v10, %v636_v3 }
 0x17e   :  { %v681_v28 = vadd.f32 %v673_v43, %v652_v12  ;;  %v901_v61 = vadd.f32 %v893_v25, %v869_v60  ;;  %v1019_v20 = vmul.f32 %v928_v41, %v694_v2  ;;  %v438_v30 = vunpack.c.h.bf16 %v2708_v54 }
 0x17f   :  { %1403 = vmatmul.mubr.f32.gmra.mrb[18].mxu0 %v1050_v15  ;;  %v979_v59 = vadd.f32 %v971_v26, %v963_v18  ;;  %v2717_v24 = vrot.slane %v2711_v14, 7  ;;  %v477_v9 = vunpack.c.h.bf16 %v2709_v19  ;;  %v506_v62 = vunpack.c.h.bf16 %v2710_v44 }
 0x180   :  { %v710_v46 = vadd.f32 %v702_v1, %v681_v28  ;;  %v917_v7 = vadd.f32 %v909_v8, %v901_v61  ;;  %v446_v52 = vmul.f32 %v438_v30, %v1874_v48  ;;  %v2718_v3 = vrot.slane %v1874_v48, 1 }
 0x181   :  { %v459_v16 = vsel %vm457_vm1, %v452_v39, %v2717_v24  ;;  %v995_v26 = vadd.f32 %v987_v55, %v979_v59  ;;  %v514_v5 = vmul.f32 %v506_v62, %v2711_v14  ;;  %v552_v39 = vunpack.c.h.bf16 %v2712_v36 }
 0x182   :  { %v532_v54 = vsel %vm531_vm2, %v529_v13, %v2718_v3  ;;  %v485_v22 = vmul.f32 %v477_v9, %v459_v16  ;;  %v724_v19 = vadd.f32 %v2134_v23, %v710_v46  ;;  %v972_v44 = vmul.f32 %v928_v41, %v608_v29 }
 0x183   :  { %v579_v32 = vunpack.c.h.bf16 %v2713_v4  ;;  %v609_v2 = vunpack.c.l.bf16 %v2719_v57  ;;  %v1011_v17 = vadd.f32 %v1003_v53, %v995_v26  ;;  %v560_v58 = vmul.f32 %v552_v39, %v532_v54 }
 0x184   :  { %v493_v43 = vadd.f32 %v485_v22, %v446_v52  ;;  %v637_v1 = vunpack.c.h.bf16 %v2714_v42  ;;  %v732_v60 = vmax.f32 %v724_v19, 0.0  ;;  %v949_v13 = vadd.f32 %v941_v40, %v917_v7  ;;  %v2724_v22 = vld [vmem:[#allocation20_spill] sm:$0xff] }
 0x185   :  { %v587_v0 = vmul.f32 %v579_v32, %v2359_v21  ;;  %v666_v8 = vunpack.c.h.bf16 %v2715_v33  ;;  %v1027_v34 = vadd.f32 %v1019_v20, %v1011_v17  ;;  %v617_v12 = vmul.f32 %v609_v2, %v532_v54 }
 0x186   :  { %v522_v36 = vadd.f32 %v514_v5, %v493_v43  ;;  %v695_v29 = vunpack.c.h.bf16 %v2716_v6  ;;  %v740_v25 = vmin.f32 %v732_v60, 6.0  ;;  %v645_v41 = vmul.f32 %v637_v1, %v459_v16  ;;  %v2726_v43 = vld [vmem:[#allocation46_spill] sm:$0xff] }
 0x187   :  { %v595_v4 = vadd.f32 %v587_v0, %v2332_v63  ;;  %v870_v53 = vmul.f32 %v438_v30, %v1890_v31  ;;  %v1035_v15 = vadd.f32 %v2134_v23, %v1027_v34  ;;  %v674_v40 = vmul.f32 %v666_v8, %v2711_v14  ;;  %v2727_v34 = vld [vmem:[#allocation49_spill] sm:$0xff] }
 0x188   :  { %v568_v42 = vadd.f32 %v560_v58, %v522_v36  ;;  %v2720_v21 = vrot.slane %v1892_v37, 7  ;;  %1361 = vmatprep.mubr.f32.mxu1 %v740_v25  ;;  %v703_v6 = vmul.f32 %v695_v29, %v532_v54  ;;  %v2721_v63 = vrot.slane %v1890_v31, 1 }
 0x189   :  { %v624_v18 = vadd.f32 %v2378_v49, %v595_v4  ;;  %v1043_v61 = vmax.f32 %v1035_v15, 0.0  ;;  %v910_v20 = vmul.f32 %v506_v62, %v1892_v37  ;;  %v956_v14 = vmul.f32 %v881_v10, %v579_v32 }
 0x18a   :  { %v880_v33 = vsel %vm457_vm1, %v876_v51, %v2720_v21  ;;  %v927_v28 = vsel %vm531_vm2, %v925_v56, %v2721_v63  ;;  %v1004_v49 = vmul.f32 %v666_v8, %v1892_v37  ;;  %v638_v56 = vunpack.c.l.bf16 %v2723_v27 }
 0x18b   :  { %v894_v55 = vmul.f32 %v880_v33, %v477_v9  ;;  %v942_v30 = vmul.f32 %v927_v28, %v552_v39  ;;  %v653_v59 = vadd.f32 %v645_v41, %v624_v18  ;;  %v973_v46 = vmul.f32 %v927_v28, %v609_v2  ;;  %v2722_v9 = vld [vmem:[#allocation13_spill] sm:$0xff]  ;;  %v2725_v39 = vld [vmem:[#allocation23_spill] sm:$0xff] }
 0x18c   :  { %v988_v7 = vmul.f32 %v880_v33, %v637_v1  ;;  %v1051_v51 = vmin.f32 %v1043_v61, 6.0  ;;  %v964_v52 = vadd.f32 %v956_v14, %v2376_v45  ;;  %v580_v3 = vunpack.c.l.bf16 %v2722_v9 }
 0x18d   :  { %v902_v24 = vadd.f32 %v894_v55, %v870_v53  ;;  %v682_v54 = vadd.f32 %v674_v40, %v653_v59  ;;  %v1020_v26 = vmul.f32 %v927_v28, %v695_v29  ;;  %v667_v5 = vunpack.c.l.bf16 %v2724_v22 }
 0x18e   :  { %1405 = vmatprep.mubr.f32.mxu0 %v1051_v51  ;;  %v980_v62 = vadd.f32 %v972_v44, %v964_v52  ;;  %v588_v10 = vmul.f32 %v580_v3, %v459_v16  ;;  %v696_v19 = vunpack.c.l.bf16 %v2725_v39  ;;  %v957_v32 = vmul.f32 %v880_v33, %v580_v3  ;;  %v2730_v52 = vld [vmem:[#allocation48_spill] sm:$0xff] }
 0x18f   :  { %v711_v2 = vadd.f32 %v703_v6, %v682_v54  ;;  %v918_v17 = vadd.f32 %v910_v20, %v902_v24  ;;  %v646_v45 = vmul.f32 %v638_v56, %v2726_v43  ;;  %v675_v37 = vmul.f32 %v667_v5, %v1874_v48  ;;  %v2729_v20 = vld [vmem:[#allocation40_spill] sm:$0xff] }
 0x190   :  { %v996_v58 = vadd.f32 %v988_v7, %v980_v62  ;;  %v596_v1 = vadd.f32 %v588_v10, %v2384_v38  ;;  %v704_v60 = vmul.f32 %v696_v19, %v2042_v50  ;;  %v965_v0 = vadd.f32 %v957_v32, %v949_v13 }
 0x191   :  { %v725_v8 = vadd.f32 %v2134_v23, %v711_v2  ;;  %v989_v44 = vmul.f32 %v2727_v34, %v638_v56  ;;  %v1005_v16 = vmul.f32 %v667_v5, %v1890_v31  ;;  %v1021_v36 = vmul.f32 %v2168_v35, %v696_v19 }
 0x192   :  { %v1012_v29 = vadd.f32 %v1004_v49, %v996_v58  ;;  %v625_v25 = vadd.f32 %v617_v12, %v596_v1  ;;  %v981_v4 = vadd.f32 %v973_v46, %v965_v0  ;;  %v581_v41 = vunpack.c.h.bf16 %v2722_v9  ;;  %v2728_v12 = vld [vmem:[#allocation47_spill] sm:$0xff] }
 0x193   :  { %v733_v48 = vmax.f32 %v725_v8, 0.0  ;;  %v610_v53 = vunpack.c.h.bf16 %v2719_v57  ;;  %v639_v38 = vunpack.c.h.bf16 %v2723_v27  ;;  %v668_v13 = vunpack.c.h.bf16 %v2724_v22  ;;  %v2731_v22 = vld [vmem:[#allocation43_spill] sm:$0xff] }
 0x194   :  { %v1028_v15 = vadd.f32 %v1020_v26, %v1012_v29  ;;  %v654_v40 = vadd.f32 %v646_v45, %v625_v25  ;;  %v997_v21 = vadd.f32 %v989_v44, %v981_v4  ;;  %v589_v33 = vmul.f32 %v581_v41, %v2726_v43  ;;  %v2732_v29 = vld [vmem:[#allocation25_spill] sm:$0xff] }
 0x195   :  { %v741_v31 = vmin.f32 %v733_v48, 6.0  ;;  %v950_v18 = vadd.f32 %v942_v30, %v918_v17  ;;  %v618_v6 = vmul.f32 %v610_v53, %v2042_v50  ;;  %v647_v55 = vmul.f32 %v639_v38, %v2728_v12  ;;  %v2733_v48 = vld [vmem:[#allocation24_spill] sm:$0xff] }
 0x196   :  { %v1036_v63 = vadd.f32 %v2134_v23, %v1028_v15  ;;  %v683_v28 = vadd.f32 %v675_v37, %v654_v40  ;;  %v1013_v61 = vadd.f32 %v1005_v16, %v997_v21  ;;  %v597_v57 = vadd.f32 %v589_v33, %v568_v42  ;;  %v2735_v15 = vld [vmem:[#allocation32_spill] sm:$0xff] }
 0x197   :  { %1362 = vmatmul.mubr.f32.gmra.mrb[4].mxu1 %v741_v31  ;;  %v676_v14 = vmul.f32 %v668_v13, %v2729_v20  ;;  %v697_v59 = vunpack.c.h.bf16 %v2725_v39  ;;  %v958_v24 = vmul.f32 %v2727_v34, %v581_v41  ;;  %v974_v46 = vmul.f32 %v2168_v35, %v610_v53 }
 0x198   :  { %v1044_v7 = vmax.f32 %v1036_v63, 0.0  ;;  %v712_v30 = vadd.f32 %v704_v60, %v683_v28  ;;  %v1029_v51 = vadd.f32 %v1021_v36, %v1013_v61  ;;  %v626_v50 = vadd.f32 %v618_v6, %v597_v57  ;;  %v2736_v6 = vld [vmem:[#allocation27_spill] sm:$0xff] }
 0x199   :  { %v705_v49 = vmul.f32 %v697_v59, %v2730_v52  ;;  %v966_v9 = vadd.f32 %v958_v24, %v950_v18  ;;  %v990_v3 = vmul.f32 %v2119_v11, %v639_v38  ;;  %v1006_v5 = vmul.f32 %v668_v13, %v2731_v22  ;;  %v2734_v38 = vld [vmem:[#allocation33_spill] sm:$0xff]  ;;  %v2739_v24 = vld [vmem:[#allocation34_spill] sm:$0xff] }
 0x19a   :  { %v1052_v54 = vmin.f32 %v1044_v7, 6.0  ;;  %v726_v42 = vadd.f32 %v2134_v23, %v712_v30  ;;  %v1037_v26 = vadd.f32 %v2134_v23, %v1029_v51  ;;  %v655_v27 = vadd.f32 %v647_v55, %v626_v50  ;;  %v2737_v55 = vld [vmem:[#allocation26_spill] sm:$0xff]  ;;  %v2740_v52 = vld [vmem:[#allocation29_spill] sm:$0xff] }
 0x19b   :  { %v982_v56 = vadd.f32 %v974_v46, %v966_v9  ;;  %v1022_v19 = vmul.f32 %v2160_v47, %v697_v59  ;;  %v1221_v47 = vld [vmem:[%s2562_s6] ss:$0 sm:$0xff]  ;;  %v2741_v9 = vld [vmem:[#allocation28_spill] sm:$0xff] }
 0x19c   :  { %1406 = vmatmul.mubr.f32.gmra.mrb[20].mxu0 %v1052_v54  ;;  %v734_v35 = vmax.f32 %v726_v42, 0.0  ;;  %v1045_v62 = vmax.f32 %v1037_v26, 0.0  ;;  %v684_v10 = vadd.f32 %v676_v14, %v655_v27  ;;  %v2738_v14 = vld [vmem:[#allocation35_spill] sm:$0xff] }
 0x19d   :  { %v998_v39 = vadd.f32 %v990_v3, %v982_v56  ;;  %v2742_v56 = vld [vmem:[#allocation37_spill] sm:$0xff] }
 0x19e   :  { %v742_v32 = vmin.f32 %v734_v35, 6.0  ;;  %v1053_v2 = vmin.f32 %v1045_v62, 6.0  ;;  %v713_v17 = vadd.f32 %v705_v49, %v684_v10 }
 0x19f   :  { %v1014_v11 = vadd.f32 %v1006_v5, %v998_v39  ;;  %v2743_v5 = vld [vmem:[#allocation36_spill] sm:$0xff] }
 0x1a0   :  { %1364 = vmatprep.mubr.f32.mxu1 %v742_v32  ;;  %1408 = vmatprep.mubr.f32.mxu0 %v1053_v2  ;;  %v727_v43 = vadd.f32 %v2134_v23, %v713_v17  ;;  %v2744_v32 = vld [vmem:[#allocation31_spill] sm:$0xff] }
 0x1a1   :  { %v1030_v45 = vadd.f32 %v1022_v19, %v1014_v11 }
 0x1a2   :  { %v735_v37 = vmax.f32 %v727_v43, 0.0  ;;  %v2745_v43 = vld [vmem:[#allocation30_spill] sm:$0xff] }
 0x1a3   :  { %v1038_v58 = vadd.f32 %v2134_v23, %v1030_v45 }
 0x1a4   :  { %v743_v1 = vmin.f32 %v735_v37, 6.0 }
 0x1a5   :  { %v1046_v60 = vmax.f32 %v1038_v58, 0.0 }
 0x1a6   :  { %1365 = vmatmul.mubr.f32.gmra.mrb[6].mxu1 %v743_v1  ;;  %v2746_v1 = vld [vmem:[#allocation39_spill] sm:$0xff] }
 0x1a7   :  { %v1054_v0 = vmin.f32 %v1046_v60, 6.0 }
 0x1a9   :  { %1409 = vmatmul.mubr.f32.gmra.mrb[22].mxu0 %v1054_v0  ;;  %v2747_v0 = vld [vmem:[#allocation38_spill] sm:$0xff] }
 0x230   :  { %v1357_v8 = vpop.f32.mrb[0].mxu1 }
 0x231   :  { %v822_v34 = vadd.f32 %v1357_v8, %v1221_v47  ;;  %v816_v44 = vpop.f32.mrb[1].mxu1 }
 0x232   :  { %v817_v36 = vadd.f32 %v1221_v47, %v816_v44 }
 0x233   :  { %v1401_v16 = vpop.f32.mrb[16].mxu0  ;;  %v856_v25 = vadd.f32 %v822_v34, %v2732_v29 }
 0x234   :  { %v1127_v4 = vadd.f32 %v1401_v16, %v1221_v47  ;;  %v1121_v41 = vpop.f32.mrb[17].mxu0  ;;  %v855_v23 = vadd.f32 %v817_v36, %v2733_v48 }
 0x235   :  { %v1122_v53 = vadd.f32 %v1221_v47, %v1121_v41  ;;  %1169 = vst.msk [vmem:[%s2563_s7 + $0x8] sm:$0xff] %vm177_vm0, %v856_v25 }
 0x236   :  { %v1161_v13 = vadd.f32 %v1127_v4, %v2734_v38  ;;  %1168 = vst.msk [vmem:[%s2563_s7] sm:$0xff] %vm177_vm0, %v855_v23 }
 0x237   :  { %v1160_v40 = vadd.f32 %v1122_v53, %v2735_v15 }
 0x238   :  { %1177 = vst.msk [vmem:[%s2563_s7 + $0x48] sm:$0xff] %vm177_vm0, %v1161_v13 }
 0x239   :  { %1176 = vst.msk [vmem:[%s2563_s7 + $0x40] sm:$0xff] %vm177_vm0, %v1160_v40 }
 0x24d   :  { %v1360_v21 = vpop.f32.mrb[2].mxu1 }
 0x24e   :  { %v832_v33 = vadd.f32 %v1360_v21, %v1221_v47  ;;  %v826_v31 = vpop.f32.mrb[3].mxu1 }
 0x24f   :  { %v827_v18 = vadd.f32 %v1221_v47, %v826_v31 }
 0x250   :  { %v858_v12 = vadd.f32 %v832_v33, %v2736_v6 }
 0x251   :  { %v857_v63 = vadd.f32 %v827_v18, %v2737_v55 }
 0x252   :  { %1171 = vst.msk [vmem:[%s2563_s7 + $0x18] sm:$0xff] %vm177_vm0, %v858_v12  ;;  %v1404_v28 = vpop.f32.mrb[18].mxu0 }
 0x253   :  { %v1137_v61 = vadd.f32 %v1404_v28, %v1221_v47  ;;  %1170 = vst.msk [vmem:[%s2563_s7 + $0x10] sm:$0xff] %vm177_vm0, %v857_v63  ;;  %v1131_v57 = vpop.f32.mrb[19].mxu0 }
 0x254   :  { %v1132_v20 = vadd.f32 %v1221_v47, %v1131_v57 }
 0x255   :  { %v1163_v59 = vadd.f32 %v1137_v61, %v2738_v14 }
 0x256   :  { %v1162_v46 = vadd.f32 %v1132_v20, %v2739_v24 }
 0x257   :  { %1179 = vst.msk [vmem:[%s2563_s7 + $0x58] sm:$0xff] %vm177_vm0, %v1163_v59 }
 0x258   :  { %1178 = vst.msk [vmem:[%s2563_s7 + $0x50] sm:$0xff] %vm177_vm0, %v1162_v46 }
 0x26a   :  { %v1363_v7 = vpop.f32.mrb[4].mxu1 }
 0x26b   :  { %v842_v30 = vadd.f32 %v1363_v7, %v1221_v47  ;;  %v836_v51 = vpop.f32.mrb[5].mxu1 }
 0x26c   :  { %v837_v50 = vadd.f32 %v1221_v47, %v836_v51 }
 0x26d   :  { %v860_v49 = vadd.f32 %v842_v30, %v2740_v52 }
 0x26e   :  { %v859_v3 = vadd.f32 %v837_v50, %v2741_v9 }
 0x26f   :  { %1173 = vst.msk [vmem:[%s2563_s7 + $0x28] sm:$0xff] %vm177_vm0, %v860_v49  ;;  %v1407_v54 = vpop.f32.mrb[20].mxu0 }
 0x270   :  { %v1147_v42 = vadd.f32 %v1407_v54, %v1221_v47  ;;  %1172 = vst.msk [vmem:[%s2563_s7 + $0x20] sm:$0xff] %vm177_vm0, %v859_v3  ;;  %v1141_v26 = vpop.f32.mrb[21].mxu0 }
 0x271   :  { %v1142_v27 = vadd.f32 %v1221_v47, %v1141_v26 }
 0x272   :  { %v1165_v22 = vadd.f32 %v1147_v42, %v2742_v56 }
 0x273   :  { %v1164_v35 = vadd.f32 %v1142_v27, %v2743_v5 }
 0x274   :  { %1181 = vst.msk [vmem:[%s2563_s7 + $0x68] sm:$0xff] %vm177_vm0, %v1165_v22 }
 0x275   :  { %1180 = vst.msk [vmem:[%s2563_s7 + $0x60] sm:$0xff] %vm177_vm0, %v1164_v35 }
 0x279   :  { %v1366_v62 = vpop.f32.mrb[6].mxu1 }
 0x27a   :  { %v852_v10 = vadd.f32 %v1366_v62, %v1221_v47  ;;  %v846_v39 = vpop.f32.mrb[7].mxu1 }
 0x27b   :  { %v847_v19 = vadd.f32 %v1221_v47, %v846_v39 }
 0x27c   :  { %v862_v2 = vadd.f32 %v852_v10, %v2744_v32  ;;  %v1410_v17 = vpop.f32.mrb[22].mxu0 }
 0x27d   :  { %v1157_v11 = vadd.f32 %v1410_v17, %v1221_v47  ;;  %v861_v45 = vadd.f32 %v847_v19, %v2745_v43  ;;  %v1151_v37 = vpop.f32.mrb[23].mxu0 }
 0x27e   :  { %1175 = vst.msk [vmem:[%s2563_s7 + $0x38] sm:$0xff] %vm177_vm0, %v862_v2  ;;  %v1152_v58 = vadd.f32 %v1221_v47, %v1151_v37 }
 0x27f   :  { %v1167_v60 = vadd.f32 %v1157_v11, %v2746_v1  ;;  %1174 = vst.msk [vmem:[%s2563_s7 + $0x30] sm:$0xff] %vm177_vm0, %v861_v45 }
 0x280   :  { %v1166_v8 = vadd.f32 %v1152_v58, %v2747_v0 }
 0x281   :  { %1183 = vst.msk [vmem:[%s2563_s7 + $0x78] sm:$0xff] %vm177_vm0, %v1167_v60 }
 0x282   :  { %1182 = vst.msk [vmem:[%s2563_s7 + $0x70] sm:$0xff] %vm177_vm0, %v1166_v8 }
 0x283   :  { %1188 = vsyncpa [#allocation5], 1 }
 0x284   :  { %1189 = vsyncmov [#allocation3] }
 0x287   :  { %s1190_s6 = vpop.sfrf %1189 }
 0x288   :  { %p1222_p8 = scmp.ne.s32.totalorder %s1190_s6, 0 }
 0x28a   :  { %1194 = shalt.err (%p1222_p8)  }

</bundles_post_ra>
